<compile_context>
chip_gen: v6e
topology: v6e:2x2x1
jax: 0.10.0
libtpu: 0.0.40
codegen_flags: <defaults>
</compile_context>

<pallas_src>
import functools

import jax
import jax.numpy as jnp
from jax import lax
from jax.experimental import pallas as pl
from jax.experimental.pallas import tpu as pltpu


# ----------------------------------------------------------------------------
# Fully fused kernel: one grid step == one batch element.
# ----------------------------------------------------------------------------
def _fused_attention_kernel(x_ref, wqkv_ref, wout_ref, bout_ref, o_ref, *,
                            heads, dim_head, scale):
    inner = heads * dim_head
    x = x_ref[0]                                          # (N, dim) f32

    # --- single lane-dense QKV projection: (N, dim) x (3*inner, dim)^T.
    qkv = lax.dot_general(
        x.astype(jnp.bfloat16), wqkv_ref[...].astype(jnp.bfloat16),
        dimension_numbers=(((1,), (1,)), ((), ())),       # contract last dims
        preferred_element_type=jnp.float32)               # (N, 3*inner) f32

    q = qkv[:, 0 * inner:1 * inner] * scale               # scale folded into q
    k = qkv[:, 1 * inner:2 * inner]
    v = qkv[:, 2 * inner:3 * inner]

    # --- per-head exact softmax attention (heads is small & static -> unrolled).
    # TODO(synk): for long sequences replace the full (N, N) score matrix with a
    #             KV-tiled online-softmax path sized for v7x's 64 MiB VMEM.
    ctxs = []
    for h in range(heads):
        lo, hi = h * dim_head, (h + 1) * dim_head
        qh = q[:, lo:hi].astype(jnp.bfloat16)             # (N, d)
        kh = k[:, lo:hi].astype(jnp.bfloat16)             # (N, d)
        vh = v[:, lo:hi].astype(jnp.bfloat16)             # (N, d)

        dots = lax.dot_general(                           # (N, N) f32
            qh, kh, dimension_numbers=(((1,), (1,)), ((), ())),
            preferred_element_type=jnp.float32)
        m = jnp.max(dots, axis=-1, keepdims=True)
        e = jnp.exp(dots - m)
        p = e * pl.reciprocal(jnp.sum(e, axis=-1, keepdims=True), approx=True)

        ctxs.append(jnp.dot(p.astype(jnp.bfloat16), vh,   # (N, d) f32
                            preferred_element_type=jnp.float32))

    ctx = jnp.concatenate(ctxs, axis=-1)                  # (N, inner), lane-dense

    # --- fused output projection + bias: (N, inner) x (dim, inner)^T + b.
    out = lax.dot_general(
        ctx.astype(jnp.bfloat16), wout_ref[...].astype(jnp.bfloat16),
        dimension_numbers=(((1,), (1,)), ((), ())),
        preferred_element_type=jnp.float32)               # (N, dim)
    o_ref[0] = out + bout_ref[...]                        # broadcast (1, dim) bias


def attention_forward(x, w_qkv, w_out, b_out, *, heads, dim_head):
    """x: (B, N, dim) f32.  w_qkv: (3*inner, dim).  w_out: (dim, inner).  b_out: (dim,)."""
    B, N, dim = x.shape
    inner = heads * dim_head
    assert w_qkv.shape == (3 * inner, dim)
    assert w_out.shape == (dim, inner)
    scale = dim_head ** (-0.5)
    b_out_2d = b_out.reshape(1, dim)

    kernel = functools.partial(
        _fused_attention_kernel, heads=heads, dim_head=dim_head, scale=scale)

    return pl.pallas_call(
        kernel,
        out_shape=jax.ShapeDtypeStruct((B, N, dim), jnp.float32),
        grid_spec=pltpu.PrefetchScalarGridSpec(
            num_scalar_prefetch=0,
            grid=(B,),
            in_specs=[
                pl.BlockSpec((1, N, dim), lambda b: (b, 0, 0)),        # x tile
                pl.BlockSpec((3 * inner, dim), lambda b: (0, 0)),      # W_qkv (resident)
                pl.BlockSpec((dim, inner), lambda b: (0, 0)),          # W_out (resident)
                pl.BlockSpec((1, dim), lambda b: (0, 0)),              # b_out
            ],
            out_specs=pl.BlockSpec((1, N, dim), lambda b: (b, 0, 0)),
        ),
        compiler_params=pltpu.CompilerParams(
            dimension_semantics=("parallel",)),   # >=2 iterations -> both v7x TCs get work
    )(x, w_qkv, w_out, b_out_2d)


# ----------------------------------------------------------------------------
# Pure-JAX f32 reference for correctness checking.
# ----------------------------------------------------------------------------
def _attention_ref(x, w_qkv, w_out, b_out, *, heads, dim_head):
    B, N, dim = x.shape
    inner = heads * dim_head
    qkv = jnp.einsum("bnd,od->bno", x, w_qkv)
    q, k, v = jnp.split(qkv, 3, axis=-1)

    def split_heads(t):
        return t.reshape(B, N, heads, dim_head).transpose(0, 2, 1, 3)

    q, k, v = map(split_heads, (q, k, v))
    dots = jnp.einsum("bhid,bhjd->bhij", q, k) * (dim_head ** -0.5)
    attn = jax.nn.softmax(dots, axis=-1)
    o = jnp.einsum("bhij,bhjd->bhid", attn, v)
    o = o.transpose(0, 2, 1, 3).reshape(B, N, inner)
    return jnp.einsum("bni,oi->bno", o, w_out) + b_out


if __name__ == "__main__":
    # Small shapes consistent with the module defaults (dim=32, heads=8, dim_head=64).
    B, N, DIM = 2, 8, 32
    HEADS, DIM_HEAD = 8, 64
    INNER = HEADS * DIM_HEAD

    key = jax.random.PRNGKey(0)
    kx, kqkv, kwo, kbo = jax.random.split(key, 4)

    x = jax.random.normal(kx, (B, N, DIM), dtype=jnp.float32)
    # Parameters follow torch nn.Linear layout: (out_features, in_features).
    w_qkv = jax.random.normal(kqkv, (3 * INNER, DIM), dtype=jnp.float32) * 0.05
    w_out = jax.random.normal(kwo, (DIM, INNER), dtype=jnp.float32) * 0.05
    b_out = jax.random.normal(kbo, (DIM,), dtype=jnp.float32) * 0.05

    out = attention_forward(x, w_qkv, w_out, b_out, heads=HEADS, dim_head=DIM_HEAD)
    out = jax.block_until_ready(out)

    ref = _attention_ref(x, w_qkv, w_out, b_out, heads=HEADS, dim_head=DIM_HEAD)
    assert out.shape == (B, N, DIM)
    # bf16 MXU inputs + approx reciprocal loosen the tolerance vs. the f32 reference.
    assert jnp.allclose(out, ref, atol=2e-2, rtol=2e-2), "mismatch vs reference"

    print("KERNEL_OK")
</pallas_src>

<mosaic_0001>
module attributes {stable_mosaic.version = 11 : i64} {
  func.func @_fused_attention_kernel(%arg0: i32, %arg1: memref<1x8x32xf32, #tpu.memory_space<vmem>>, %arg2: memref<1536x32xf32, #tpu.memory_space<vmem>>, %arg3: memref<32x512xf32, #tpu.memory_space<vmem>>, %arg4: memref<1x32xf32, #tpu.memory_space<vmem>>, %arg5: memref<1x8x32xf32, #tpu.memory_space<vmem>>) attributes {dimension_semantics = [#tpu.dimension_semantics<parallel>], iteration_bounds = array<i64: 2>, scalar_prefetch = 0 : i64, scratch_operands = 0 : i64, tpu.core_type = #tpu.core_type<tc>, window_params = [{transform_indices = @transform_0, window_bounds = array<i64: 1, 8, 32>}, {pipeline_mode = #tpu.pipeline_mode<synchronous>, transform_indices = @transform_1, window_bounds = array<i64: 1536, 32>}, {pipeline_mode = #tpu.pipeline_mode<synchronous>, transform_indices = @transform_2, window_bounds = array<i64: 32, 512>}, {pipeline_mode = #tpu.pipeline_mode<synchronous>, transform_indices = @transform_3, window_bounds = array<i64: 1, 32>}, {transform_indices = @transform_4, window_bounds = array<i64: 1, 8, 32>}]} {
    %c0 = arith.constant 0 : index
    %c0_0 = arith.constant 0 : index
    %c0_1 = arith.constant 0 : index
    %0 = vector.load %arg1[%c0, %c0_0, %c0_1] : memref<1x8x32xf32, #tpu.memory_space<vmem>>, vector<1x8x32xf32>
    %1 = vector.shape_cast %0 : vector<1x8x32xf32> to vector<8x32xf32>
    %2 = arith.truncf %1 : vector<8x32xf32> to vector<8x32xbf16>
    %c0_2 = arith.constant 0 : index
    %c0_3 = arith.constant 0 : index
    %3 = vector.load %arg2[%c0_2, %c0_3] : memref<1536x32xf32, #tpu.memory_space<vmem>>, vector<1536x32xf32>
    %4 = arith.truncf %3 : vector<1536x32xf32> to vector<1536x32xbf16>
    %cst = arith.constant dense<0.000000e+00> : vector<8x1536xf32>
    %5 = tpu.matmul %2, %4, %cst {dimension_numbers = #tpu.dot_dimension_numbers<[1], [1], [0], [0], [0, 0, 1, 0], [], []>} : vector<8x32xbf16>, vector<1536x32xbf16>, vector<8x1536xf32> -> vector<8x1536xf32>
    %6 = vector.extract_strided_slice %5 {offsets = [0, 0], sizes = [8, 512], strides = [1, 1]} : vector<8x1536xf32> to vector<8x512xf32>
    %cst_4 = arith.constant 1.250000e-01 : f32
    %7 = vector.broadcast %cst_4 : f32 to vector<8x512xf32>
    %8 = arith.mulf %6, %7 : vector<8x512xf32>
    %9 = vector.extract_strided_slice %5 {offsets = [0, 512], sizes = [8, 512], strides = [1, 1]} : vector<8x1536xf32> to vector<8x512xf32>
    %10 = vector.extract_strided_slice %5 {offsets = [0, 1024], sizes = [8, 512], strides = [1, 1]} : vector<8x1536xf32> to vector<8x512xf32>
    %11 = vector.extract_strided_slice %8 {offsets = [0, 0], sizes = [8, 64], strides = [1, 1]} : vector<8x512xf32> to vector<8x64xf32>
    %12 = arith.truncf %11 : vector<8x64xf32> to vector<8x64xbf16>
    %13 = vector.extract_strided_slice %9 {offsets = [0, 0], sizes = [8, 64], strides = [1, 1]} : vector<8x512xf32> to vector<8x64xf32>
    %14 = arith.truncf %13 : vector<8x64xf32> to vector<8x64xbf16>
    %15 = vector.extract_strided_slice %10 {offsets = [0, 0], sizes = [8, 64], strides = [1, 1]} : vector<8x512xf32> to vector<8x64xf32>
    %16 = arith.truncf %15 : vector<8x64xf32> to vector<8x64xbf16>
    %cst_5 = arith.constant dense<0.000000e+00> : vector<8x8xf32>
    %17 = tpu.matmul %12, %14, %cst_5 {dimension_numbers = #tpu.dot_dimension_numbers<[1], [1], [0], [0], [0, 0, 1, 0], [], []>} : vector<8x64xbf16>, vector<8x64xbf16>, vector<8x8xf32> -> vector<8x8xf32>
    %cst_6 = arith.constant dense<0xFF800000> : vector<8xf32>
    %18 = vector.multi_reduction <maximumf>, %17, %cst_6 [1] : vector<8x8xf32> to vector<8xf32>
    %19 = vector.shape_cast %18 : vector<8xf32> to vector<8x1xf32>
    %20 = vector.broadcast %19 : vector<8x1xf32> to vector<8x8xf32>
    %21 = arith.subf %17, %20 : vector<8x8xf32>
    %22 = math.exp %21 : vector<8x8xf32>
    %cst_7 = arith.constant dense<0.000000e+00> : vector<8xf32>
    %23 = vector.multi_reduction <add>, %22, %cst_7 [1] : vector<8x8xf32> to vector<8xf32>
    %24 = vector.shape_cast %23 : vector<8xf32> to vector<8x1xf32>
    %25 = tpu.reciprocal %24 {approx = true} : vector<8x1xf32> -> vector<8x1xf32>
    %26 = vector.broadcast %25 : vector<8x1xf32> to vector<8x8xf32>
    %27 = arith.mulf %22, %26 : vector<8x8xf32>
    %28 = arith.truncf %27 : vector<8x8xf32> to vector<8x8xbf16>
    %cst_8 = arith.constant dense<0.000000e+00> : vector<8x64xf32>
    %29 = tpu.matmul %28, %16, %cst_8 {dimension_numbers = #tpu.dot_dimension_numbers<[1], [0], [0], [1], [0, 0, 1, 1], [], []>} : vector<8x8xbf16>, vector<8x64xbf16>, vector<8x64xf32> -> vector<8x64xf32>
    %30 = vector.extract_strided_slice %8 {offsets = [0, 64], sizes = [8, 64], strides = [1, 1]} : vector<8x512xf32> to vector<8x64xf32>
    %31 = arith.truncf %30 : vector<8x64xf32> to vector<8x64xbf16>
    %32 = vector.extract_strided_slice %9 {offsets = [0, 64], sizes = [8, 64], strides = [1, 1]} : vector<8x512xf32> to vector<8x64xf32>
    %33 = arith.truncf %32 : vector<8x64xf32> to vector<8x64xbf16>
    %34 = vector.extract_strided_slice %10 {offsets = [0, 64], sizes = [8, 64], strides = [1, 1]} : vector<8x512xf32> to vector<8x64xf32>
    %35 = arith.truncf %34 : vector<8x64xf32> to vector<8x64xbf16>
    %cst_9 = arith.constant dense<0.000000e+00> : vector<8x8xf32>
    %36 = tpu.matmul %31, %33, %cst_9 {dimension_numbers = #tpu.dot_dimension_numbers<[1], [1], [0], [0], [0, 0, 1, 0], [], []>} : vector<8x64xbf16>, vector<8x64xbf16>, vector<8x8xf32> -> vector<8x8xf32>
    %cst_10 = arith.constant dense<0xFF800000> : vector<8xf32>
    %37 = vector.multi_reduction <maximumf>, %36, %cst_10 [1] : vector<8x8xf32> to vector<8xf32>
    %38 = vector.shape_cast %37 : vector<8xf32> to vector<8x1xf32>
    %39 = vector.broadcast %38 : vector<8x1xf32> to vector<8x8xf32>
    %40 = arith.subf %36, %39 : vector<8x8xf32>
    %41 = math.exp %40 : vector<8x8xf32>
    %cst_11 = arith.constant dense<0.000000e+00> : vector<8xf32>
    %42 = vector.multi_reduction <add>, %41, %cst_11 [1] : vector<8x8xf32> to vector<8xf32>
    %43 = vector.shape_cast %42 : vector<8xf32> to vector<8x1xf32>
    %44 = tpu.reciprocal %43 {approx = true} : vector<8x1xf32> -> vector<8x1xf32>
    %45 = vector.broadcast %44 : vector<8x1xf32> to vector<8x8xf32>
    %46 = arith.mulf %41, %45 : vector<8x8xf32>
    %47 = arith.truncf %46 : vector<8x8xf32> to vector<8x8xbf16>
    %cst_12 = arith.constant dense<0.000000e+00> : vector<8x64xf32>
    %48 = tpu.matmul %47, %35, %cst_12 {dimension_numbers = #tpu.dot_dimension_numbers<[1], [0], [0], [1], [0, 0, 1, 1], [], []>} : vector<8x8xbf16>, vector<8x64xbf16>, vector<8x64xf32> -> vector<8x64xf32>
    %49 = vector.extract_strided_slice %8 {offsets = [0, 128], sizes = [8, 64], strides = [1, 1]} : vector<8x512xf32> to vector<8x64xf32>
    %50 = arith.truncf %49 : vector<8x64xf32> to vector<8x64xbf16>
    %51 = vector.extract_strided_slice %9 {offsets = [0, 128], sizes = [8, 64], strides = [1, 1]} : vector<8x512xf32> to vector<8x64xf32>
    %52 = arith.truncf %51 : vector<8x64xf32> to vector<8x64xbf16>
    %53 = vector.extract_strided_slice %10 {offsets = [0, 128], sizes = [8, 64], strides = [1, 1]} : vector<8x512xf32> to vector<8x64xf32>
    %54 = arith.truncf %53 : vector<8x64xf32> to vector<8x64xbf16>
    %cst_13 = arith.constant dense<0.000000e+00> : vector<8x8xf32>
    %55 = tpu.matmul %50, %52, %cst_13 {dimension_numbers = #tpu.dot_dimension_numbers<[1], [1], [0], [0], [0, 0, 1, 0], [], []>} : vector<8x64xbf16>, vector<8x64xbf16>, vector<8x8xf32> -> vector<8x8xf32>
    %cst_14 = arith.constant dense<0xFF800000> : vector<8xf32>
    %56 = vector.multi_reduction <maximumf>, %55, %cst_14 [1] : vector<8x8xf32> to vector<8xf32>
    %57 = vector.shape_cast %56 : vector<8xf32> to vector<8x1xf32>
    %58 = vector.broadcast %57 : vector<8x1xf32> to vector<8x8xf32>
    %59 = arith.subf %55, %58 : vector<8x8xf32>
    %60 = math.exp %59 : vector<8x8xf32>
    %cst_15 = arith.constant dense<0.000000e+00> : vector<8xf32>
    %61 = vector.multi_reduction <add>, %60, %cst_15 [1] : vector<8x8xf32> to vector<8xf32>
    %62 = vector.shape_cast %61 : vector<8xf32> to vector<8x1xf32>
    %63 = tpu.reciprocal %62 {approx = true} : vector<8x1xf32> -> vector<8x1xf32>
    %64 = vector.broadcast %63 : vector<8x1xf32> to vector<8x8xf32>
    %65 = arith.mulf %60, %64 : vector<8x8xf32>
    %66 = arith.truncf %65 : vector<8x8xf32> to vector<8x8xbf16>
    %cst_16 = arith.constant dense<0.000000e+00> : vector<8x64xf32>
    %67 = tpu.matmul %66, %54, %cst_16 {dimension_numbers = #tpu.dot_dimension_numbers<[1], [0], [0], [1], [0, 0, 1, 1], [], []>} : vector<8x8xbf16>, vector<8x64xbf16>, vector<8x64xf32> -> vector<8x64xf32>
    %68 = vector.extract_strided_slice %8 {offsets = [0, 192], sizes = [8, 64], strides = [1, 1]} : vector<8x512xf32> to vector<8x64xf32>
    %69 = arith.truncf %68 : vector<8x64xf32> to vector<8x64xbf16>
    %70 = vector.extract_strided_slice %9 {offsets = [0, 192], sizes = [8, 64], strides = [1, 1]} : vector<8x512xf32> to vector<8x64xf32>
    %71 = arith.truncf %70 : vector<8x64xf32> to vector<8x64xbf16>
    %72 = vector.extract_strided_slice %10 {offsets = [0, 192], sizes = [8, 64], strides = [1, 1]} : vector<8x512xf32> to vector<8x64xf32>
    %73 = arith.truncf %72 : vector<8x64xf32> to vector<8x64xbf16>
    %cst_17 = arith.constant dense<0.000000e+00> : vector<8x8xf32>
    %74 = tpu.matmul %69, %71, %cst_17 {dimension_numbers = #tpu.dot_dimension_numbers<[1], [1], [0], [0], [0, 0, 1, 0], [], []>} : vector<8x64xbf16>, vector<8x64xbf16>, vector<8x8xf32> -> vector<8x8xf32>
    %cst_18 = arith.constant dense<0xFF800000> : vector<8xf32>
    %75 = vector.multi_reduction <maximumf>, %74, %cst_18 [1] : vector<8x8xf32> to vector<8xf32>
    %76 = vector.shape_cast %75 : vector<8xf32> to vector<8x1xf32>
    %77 = vector.broadcast %76 : vector<8x1xf32> to vector<8x8xf32>
    %78 = arith.subf %74, %77 : vector<8x8xf32>
    %79 = math.exp %78 : vector<8x8xf32>
    %cst_19 = arith.constant dense<0.000000e+00> : vector<8xf32>
    %80 = vector.multi_reduction <add>, %79, %cst_19 [1] : vector<8x8xf32> to vector<8xf32>
    %81 = vector.shape_cast %80 : vector<8xf32> to vector<8x1xf32>
    %82 = tpu.reciprocal %81 {approx = true} : vector<8x1xf32> -> vector<8x1xf32>
    %83 = vector.broadcast %82 : vector<8x1xf32> to vector<8x8xf32>
    %84 = arith.mulf %79, %83 : vector<8x8xf32>
    %85 = arith.truncf %84 : vector<8x8xf32> to vector<8x8xbf16>
    %cst_20 = arith.constant dense<0.000000e+00> : vector<8x64xf32>
    %86 = tpu.matmul %85, %73, %cst_20 {dimension_numbers = #tpu.dot_dimension_numbers<[1], [0], [0], [1], [0, 0, 1, 1], [], []>} : vector<8x8xbf16>, vector<8x64xbf16>, vector<8x64xf32> -> vector<8x64xf32>
    %87 = vector.extract_strided_slice %8 {offsets = [0, 256], sizes = [8, 64], strides = [1, 1]} : vector<8x512xf32> to vector<8x64xf32>
    %88 = arith.truncf %87 : vector<8x64xf32> to vector<8x64xbf16>
    %89 = vector.extract_strided_slice %9 {offsets = [0, 256], sizes = [8, 64], strides = [1, 1]} : vector<8x512xf32> to vector<8x64xf32>
    %90 = arith.truncf %89 : vector<8x64xf32> to vector<8x64xbf16>
    %91 = vector.extract_strided_slice %10 {offsets = [0, 256], sizes = [8, 64], strides = [1, 1]} : vector<8x512xf32> to vector<8x64xf32>
    %92 = arith.truncf %91 : vector<8x64xf32> to vector<8x64xbf16>
    %cst_21 = arith.constant dense<0.000000e+00> : vector<8x8xf32>
    %93 = tpu.matmul %88, %90, %cst_21 {dimension_numbers = #tpu.dot_dimension_numbers<[1], [1], [0], [0], [0, 0, 1, 0], [], []>} : vector<8x64xbf16>, vector<8x64xbf16>, vector<8x8xf32> -> vector<8x8xf32>
    %cst_22 = arith.constant dense<0xFF800000> : vector<8xf32>
    %94 = vector.multi_reduction <maximumf>, %93, %cst_22 [1] : vector<8x8xf32> to vector<8xf32>
    %95 = vector.shape_cast %94 : vector<8xf32> to vector<8x1xf32>
    %96 = vector.broadcast %95 : vector<8x1xf32> to vector<8x8xf32>
    %97 = arith.subf %93, %96 : vector<8x8xf32>
    %98 = math.exp %97 : vector<8x8xf32>
    %cst_23 = arith.constant dense<0.000000e+00> : vector<8xf32>
    %99 = vector.multi_reduction <add>, %98, %cst_23 [1] : vector<8x8xf32> to vector<8xf32>
    %100 = vector.shape_cast %99 : vector<8xf32> to vector<8x1xf32>
    %101 = tpu.reciprocal %100 {approx = true} : vector<8x1xf32> -> vector<8x1xf32>
    %102 = vector.broadcast %101 : vector<8x1xf32> to vector<8x8xf32>
    %103 = arith.mulf %98, %102 : vector<8x8xf32>
    %104 = arith.truncf %103 : vector<8x8xf32> to vector<8x8xbf16>
    %cst_24 = arith.constant dense<0.000000e+00> : vector<8x64xf32>
    %105 = tpu.matmul %104, %92, %cst_24 {dimension_numbers = #tpu.dot_dimension_numbers<[1], [0], [0], [1], [0, 0, 1, 1], [], []>} : vector<8x8xbf16>, vector<8x64xbf16>, vector<8x64xf32> -> vector<8x64xf32>
    %106 = vector.extract_strided_slice %8 {offsets = [0, 320], sizes = [8, 64], strides = [1, 1]} : vector<8x512xf32> to vector<8x64xf32>
    %107 = arith.truncf %106 : vector<8x64xf32> to vector<8x64xbf16>
    %108 = vector.extract_strided_slice %9 {offsets = [0, 320], sizes = [8, 64], strides = [1, 1]} : vector<8x512xf32> to vector<8x64xf32>
    %109 = arith.truncf %108 : vector<8x64xf32> to vector<8x64xbf16>
    %110 = vector.extract_strided_slice %10 {offsets = [0, 320], sizes = [8, 64], strides = [1, 1]} : vector<8x512xf32> to vector<8x64xf32>
    %111 = arith.truncf %110 : vector<8x64xf32> to vector<8x64xbf16>
    %cst_25 = arith.constant dense<0.000000e+00> : vector<8x8xf32>
    %112 = tpu.matmul %107, %109, %cst_25 {dimension_numbers = #tpu.dot_dimension_numbers<[1], [1], [0], [0], [0, 0, 1, 0], [], []>} : vector<8x64xbf16>, vector<8x64xbf16>, vector<8x8xf32> -> vector<8x8xf32>
    %cst_26 = arith.constant dense<0xFF800000> : vector<8xf32>
    %113 = vector.multi_reduction <maximumf>, %112, %cst_26 [1] : vector<8x8xf32> to vector<8xf32>
    %114 = vector.shape_cast %113 : vector<8xf32> to vector<8x1xf32>
    %115 = vector.broadcast %114 : vector<8x1xf32> to vector<8x8xf32>
    %116 = arith.subf %112, %115 : vector<8x8xf32>
    %117 = math.exp %116 : vector<8x8xf32>
    %cst_27 = arith.constant dense<0.000000e+00> : vector<8xf32>
    %118 = vector.multi_reduction <add>, %117, %cst_27 [1] : vector<8x8xf32> to vector<8xf32>
    %119 = vector.shape_cast %118 : vector<8xf32> to vector<8x1xf32>
    %120 = tpu.reciprocal %119 {approx = true} : vector<8x1xf32> -> vector<8x1xf32>
    %121 = vector.broadcast %120 : vector<8x1xf32> to vector<8x8xf32>
    %122 = arith.mulf %117, %121 : vector<8x8xf32>
    %123 = arith.truncf %122 : vector<8x8xf32> to vector<8x8xbf16>
    %cst_28 = arith.constant dense<0.000000e+00> : vector<8x64xf32>
    %124 = tpu.matmul %123, %111, %cst_28 {dimension_numbers = #tpu.dot_dimension_numbers<[1], [0], [0], [1], [0, 0, 1, 1], [], []>} : vector<8x8xbf16>, vector<8x64xbf16>, vector<8x64xf32> -> vector<8x64xf32>
    %125 = vector.extract_strided_slice %8 {offsets = [0, 384], sizes = [8, 64], strides = [1, 1]} : vector<8x512xf32> to vector<8x64xf32>
    %126 = arith.truncf %125 : vector<8x64xf32> to vector<8x64xbf16>
    %127 = vector.extract_strided_slice %9 {offsets = [0, 384], sizes = [8, 64], strides = [1, 1]} : vector<8x512xf32> to vector<8x64xf32>
    %128 = arith.truncf %127 : vector<8x64xf32> to vector<8x64xbf16>
    %129 = vector.extract_strided_slice %10 {offsets = [0, 384], sizes = [8, 64], strides = [1, 1]} : vector<8x512xf32> to vector<8x64xf32>
    %130 = arith.truncf %129 : vector<8x64xf32> to vector<8x64xbf16>
    %cst_29 = arith.constant dense<0.000000e+00> : vector<8x8xf32>
    %131 = tpu.matmul %126, %128, %cst_29 {dimension_numbers = #tpu.dot_dimension_numbers<[1], [1], [0], [0], [0, 0, 1, 0], [], []>} : vector<8x64xbf16>, vector<8x64xbf16>, vector<8x8xf32> -> vector<8x8xf32>
    %cst_30 = arith.constant dense<0xFF800000> : vector<8xf32>
    %132 = vector.multi_reduction <maximumf>, %131, %cst_30 [1] : vector<8x8xf32> to vector<8xf32>
    %133 = vector.shape_cast %132 : vector<8xf32> to vector<8x1xf32>
    %134 = vector.broadcast %133 : vector<8x1xf32> to vector<8x8xf32>
    %135 = arith.subf %131, %134 : vector<8x8xf32>
    %136 = math.exp %135 : vector<8x8xf32>
    %cst_31 = arith.constant dense<0.000000e+00> : vector<8xf32>
    %137 = vector.multi_reduction <add>, %136, %cst_31 [1] : vector<8x8xf32> to vector<8xf32>
    %138 = vector.shape_cast %137 : vector<8xf32> to vector<8x1xf32>
    %139 = tpu.reciprocal %138 {approx = true} : vector<8x1xf32> -> vector<8x1xf32>
    %140 = vector.broadcast %139 : vector<8x1xf32> to vector<8x8xf32>
    %141 = arith.mulf %136, %140 : vector<8x8xf32>
    %142 = arith.truncf %141 : vector<8x8xf32> to vector<8x8xbf16>
    %cst_32 = arith.constant dense<0.000000e+00> : vector<8x64xf32>
    %143 = tpu.matmul %142, %130, %cst_32 {dimension_numbers = #tpu.dot_dimension_numbers<[1], [0], [0], [1], [0, 0, 1, 1], [], []>} : vector<8x8xbf16>, vector<8x64xbf16>, vector<8x64xf32> -> vector<8x64xf32>
    %144 = vector.extract_strided_slice %8 {offsets = [0, 448], sizes = [8, 64], strides = [1, 1]} : vector<8x512xf32> to vector<8x64xf32>
    %145 = arith.truncf %144 : vector<8x64xf32> to vector<8x64xbf16>
    %146 = vector.extract_strided_slice %9 {offsets = [0, 448], sizes = [8, 64], strides = [1, 1]} : vector<8x512xf32> to vector<8x64xf32>
    %147 = arith.truncf %146 : vector<8x64xf32> to vector<8x64xbf16>
    %148 = vector.extract_strided_slice %10 {offsets = [0, 448], sizes = [8, 64], strides = [1, 1]} : vector<8x512xf32> to vector<8x64xf32>
    %149 = arith.truncf %148 : vector<8x64xf32> to vector<8x64xbf16>
    %cst_33 = arith.constant dense<0.000000e+00> : vector<8x8xf32>
    %150 = tpu.matmul %145, %147, %cst_33 {dimension_numbers = #tpu.dot_dimension_numbers<[1], [1], [0], [0], [0, 0, 1, 0], [], []>} : vector<8x64xbf16>, vector<8x64xbf16>, vector<8x8xf32> -> vector<8x8xf32>
    %cst_34 = arith.constant dense<0xFF800000> : vector<8xf32>
    %151 = vector.multi_reduction <maximumf>, %150, %cst_34 [1] : vector<8x8xf32> to vector<8xf32>
    %152 = vector.shape_cast %151 : vector<8xf32> to vector<8x1xf32>
    %153 = vector.broadcast %152 : vector<8x1xf32> to vector<8x8xf32>
    %154 = arith.subf %150, %153 : vector<8x8xf32>
    %155 = math.exp %154 : vector<8x8xf32>
    %cst_35 = arith.constant dense<0.000000e+00> : vector<8xf32>
    %156 = vector.multi_reduction <add>, %155, %cst_35 [1] : vector<8x8xf32> to vector<8xf32>
    %157 = vector.shape_cast %156 : vector<8xf32> to vector<8x1xf32>
    %158 = tpu.reciprocal %157 {approx = true} : vector<8x1xf32> -> vector<8x1xf32>
    %159 = vector.broadcast %158 : vector<8x1xf32> to vector<8x8xf32>
    %160 = arith.mulf %155, %159 : vector<8x8xf32>
    %161 = arith.truncf %160 : vector<8x8xf32> to vector<8x8xbf16>
    %cst_36 = arith.constant dense<0.000000e+00> : vector<8x64xf32>
    %162 = tpu.matmul %161, %149, %cst_36 {dimension_numbers = #tpu.dot_dimension_numbers<[1], [0], [0], [1], [0, 0, 1, 1], [], []>} : vector<8x8xbf16>, vector<8x64xbf16>, vector<8x64xf32> -> vector<8x64xf32>
    %163 = tpu.concatenate %29, %48, %67, %86, %105, %124, %143, %162 in 1 : vector<8x64xf32>, vector<8x64xf32>, vector<8x64xf32>, vector<8x64xf32>, vector<8x64xf32>, vector<8x64xf32>, vector<8x64xf32>, vector<8x64xf32> -> vector<8x512xf32>
    %164 = arith.truncf %163 : vector<8x512xf32> to vector<8x512xbf16>
    %c0_37 = arith.constant 0 : index
    %c0_38 = arith.constant 0 : index
    %165 = vector.load %arg3[%c0_37, %c0_38] : memref<32x512xf32, #tpu.memory_space<vmem>>, vector<32x512xf32>
    %166 = arith.truncf %165 : vector<32x512xf32> to vector<32x512xbf16>
    %cst_39 = arith.constant dense<0.000000e+00> : vector<8x32xf32>
    %167 = tpu.matmul %164, %166, %cst_39 {dimension_numbers = #tpu.dot_dimension_numbers<[1], [1], [0], [0], [0, 0, 1, 0], [], []>} : vector<8x512xbf16>, vector<32x512xbf16>, vector<8x32xf32> -> vector<8x32xf32>
    %c0_40 = arith.constant 0 : index
    %c0_41 = arith.constant 0 : index
    %168 = vector.load %arg4[%c0_40, %c0_41] : memref<1x32xf32, #tpu.memory_space<vmem>>, vector<1x32xf32>
    %169 = vector.broadcast %168 : vector<1x32xf32> to vector<8x32xf32>
    %170 = arith.addf %167, %169 : vector<8x32xf32>
    %c0_42 = arith.constant 0 : index
    %c0_43 = arith.constant 0 : index
    %c0_44 = arith.constant 0 : index
    %171 = vector.load %arg5[%c0_42, %c0_43, %c0_44] : memref<1x8x32xf32, #tpu.memory_space<vmem>>, vector<1x8x32xf32>
    %172 = vector.shape_cast %171 : vector<1x8x32xf32> to vector<8x32xf32>
    %173 = vector.shape_cast %170 : vector<8x32xf32> to vector<1x8x32xf32>
    tpu.vector_store %arg5[%c0_42, %c0_43, %c0_44], %173 {strides = array<i32>} : memref<1x8x32xf32, #tpu.memory_space<vmem>>, vector<1x8x32xf32>,
    return
  }
  func.func @transform_0(%arg0: i32) -> (i32, i32, i32) {
    %c0_i32 = arith.constant 0 : i32
    %c0_i32_0 = arith.constant 0 : i32
    %c0_i32_1 = arith.constant 0 : i32
    return %arg0, %c0_i32, %c0_i32_0 : i32, i32, i32
  }
  func.func @transform_1(%arg0: i32) -> (i32, i32) {
    %c0_i32 = arith.constant 0 : i32
    %c0_i32_0 = arith.constant 0 : i32
    %c0_i32_1 = arith.constant 0 : i32
    return %c0_i32, %c0_i32_0 : i32, i32
  }
  func.func @transform_2(%arg0: i32) -> (i32, i32) {
    %c0_i32 = arith.constant 0 : i32
    %c0_i32_0 = arith.constant 0 : i32
    %c0_i32_1 = arith.constant 0 : i32
    return %c0_i32, %c0_i32_0 : i32, i32
  }
  func.func @transform_3(%arg0: i32) -> (i32, i32) {
    %c0_i32 = arith.constant 0 : i32
    %c0_i32_0 = arith.constant 0 : i32
    %c0_i32_1 = arith.constant 0 : i32
    return %c0_i32, %c0_i32_0 : i32, i32
  }
  func.func @transform_4(%arg0: i32) -> (i32, i32, i32) {
    %c0_i32 = arith.constant 0 : i32
    %c0_i32_0 = arith.constant 0 : i32
    %c0_i32_1 = arith.constant 0 : i32
    return %arg0, %c0_i32, %c0_i32_0 : i32, i32, i32
  }
}

</mosaic_0001>

<bundles_post_ra>
// kernel: tpu_custom_call.1
= control target key start
LH: loop header
LB: loop body
LE: loop exit
PB: predicated region body
PF: predicated region fallthrough
CT: control target
= control target key end

     0   :  { %9 = vsyncpa [#allocation3], 0  ;;  %s3640_s0 = inlined_call_operand.vmem [shape: f32[2,8,32], index: 0, kind: input, shape index: {}]   ;;  %s3641_s1 = inlined_call_operand.vmem [shape: f32[1536,32], index: 1, kind: input, shape index: {}]   ;;  %s3642_s2 = inlined_call_operand.vmem [shape: f32[32,512], index: 2, kind: input, shape index: {}]   ;;  %s3643_s3 = inlined_call_operand.vmem [shape: f32[1,32], index: 3, kind: input, shape index: {}]   ;;  %s3644_s4 = inlined_call_operand.hbm [shape: f32[2,8,32], index: 4, kind: output, shape index: {}]  }
   0x1   :  { %11 = vsyncpa [#allocation3 + $0x1], 0  ;;  %s2610_s15 = smov 0   ;;  %s2612_s16 = smov 0  }
   0x2   :  { %s2614_s17 = smov 0   ;;  %s2616_s18 = smov 0  }
   0x3 LB: > { %s2631_s19 = sadd.s32 4294967295, %s2579_s18   ;;  %s2118_s20 = sadd.s32 4294967294, %s2579_s18   ;;  %s2579_s18 = sphi %s2616_s18, %s3650_s18   ;;  %s2575_s17 = sphi %s2614_s17, %s3649_s17   ;;  %s2571_s16 = sphi %s2612_s16, %s3648_s16   ;;  %s2567_s15 = sphi %s2610_s15, %s3647_s15  }
   0x4   : > { %s2635_s21 = sadd.s32 1, %s2579_s18   ;;  %s113_s22 = sadd.s32 1, %s2575_s17 }
   0x5   : > { %s110_s23 = ssub.s32 %s2579_s18, %s2635_s21  ;;  %p123_p0 = scmp.ne.s32.totalorder %s2575_s17, %s2571_s16 }
   0x6   : > { %p111_p1 = scmp.eq.s32.totalorder %s110_s23, 0  ;;  %p124_p2 = scmp.eq.s32.totalorder %s2631_s19, 1 }
   0x7   : > { %p129_p3 = scmp.ne.s32.totalorder %s2571_s16, %s2567_s15  ;;  %p130_p4 = scmp.eq.s32.totalorder %s2118_s20, 1 }
   0x8   : > { %s2646_s24 = scalar_select %p111_p1, %s2575_s17, %s113_s22  }
   0x9   : > { %p2648_p5 = por %p124_p2, %p123_p0  ;;  %p2652_p6 = por %p130_p4, %p129_p3 }
   0xa   : > { %p2121_p7 = scmp.ge.s32.totalorder %s2579_s18, 1  ;;  %p164_p8 = scmp.lt.s32.totalorder %s2579_s18, 3 }
   0xc   : > { %p165_p9 = pnand %p2121_p7, %p164_p8 }
   0xd   : > { %p189_p10 = scmp.lt.s32.totalorder (!%p165_p9), %s2631_s19, 1  ;;  %s2583_s29 = smov (!%p165_p9), 64  }
   0xe   : > { %168 = sbr.rel (%p165_p9) target bundleno = 1591 (0x637), region = 36  ;;  %s2148_s8 = sshll.u32 (!%p165_p9), %s2631_s19, 7 }
   0xf   : > { %s3598_s13 = scalar_lea.hbm (!%p165_p9), %s3644_s4, %s2148_s8  ;;  %s2584_s14 = smov (!%p165_p9), [#allocation2]  }
  0x13   : > { %v226_v0 = vld [vmem:[%s3641_s1 + $0xf0] sm:$0xff]  ;;  %v227_v1 = vld [vmem:[%s3641_s1 + $0xf8] sm:$0xff]  ;;  %vm484_vm0 = vcmask 261120   ;;  %v224_v5 = vld [vmem:[%s3641_s1 + $0xe0] sm:$0xff]  ;;  %s190_s6 = scalar_select %p189_p10, %s2631_s19, 1  ;;  %vm2582_vm1 = vmmov 0  }
  0x14   : > { %v210_v2 = vld [vmem:[%s3641_s1 + $0x70] sm:$0xff]  ;;  %v403_v3 = vpack.c.bf16 %v227_v1, %v226_v0  ;;  %v211_v4 = vld [vmem:[%s3641_s1 + $0x78] sm:$0xff]  ;;  %v225_v6 = vld [vmem:[%s3641_s1 + $0xe8] sm:$0xff]  ;;  %vm1029_vm2 = vcmask 523264   ;;  %vm1092_vm3 = vcmask 1043456   ;;  %vm1076_vm4 = vcmask 64512  }
  0x15   : > { %v395_v7 = vpack.c.bf16 %v211_v4, %v210_v2  ;;  %v402_v8 = vpack.c.bf16 %v225_v6, %v224_v5  ;;  %v208_v9 = vld [vmem:[%s3641_s1 + $0x60] sm:$0xff]  ;;  %v209_v10 = vld [vmem:[%s3641_s1 + $0x68] sm:$0xff]  ;;  %v222_v13 = vld [vmem:[%s3641_s1 + $0xd0] sm:$0xff]  ;;  %s2123_s30 = sshll.u32 %s190_s6, 3 }
  0x16   : > { %2387 = vmatprep.subr.msk.bf16.mxu0 %vm484_vm0, %v403_v3  ;;  %v394_v12 = vpack.c.bf16 %v209_v10, %v208_v9  ;;  %v258_v14 = vld [vmem:[%s3641_s1 + $0x1f0] sm:$0xff]  ;;  %v259_v15 = vld [vmem:[%s3641_s1 + $0x1f8] sm:$0xff]  ;;  %v256_v21 = vld [vmem:[%s3641_s1 + $0x1e0] sm:$0xff]  ;;  %s192_s20 = scalar_lea.vmem %s3640_s0, %s2123_s30 }
  0x17   : > { %v510_v11 = vsel %vm484_vm0, %v395_v7, 0  ;;  %v223_v16 = vld [vmem:[%s3641_s1 + $0xd8] sm:$0xff]  ;;  %v419_v17 = vpack.c.bf16 %v259_v15, %v258_v14  ;;  %v242_v18 = vld [vmem:[%s3641_s1 + $0x170] sm:$0xff]  ;;  %v257_v22 = vld [vmem:[%s3641_s1 + $0x1e8] sm:$0xff] }
  0x18   : > { %2152 = vmatpush3.bf16.xpose.msra.mxu0 %v510_v11  ;;  %v243_v19 = vld [vmem:[%s3641_s1 + $0x178] sm:$0xff]  ;;  %v507_v23 = vsel %vm484_vm0, %v394_v12, 0  ;;  %v401_v24 = vpack.c.bf16 %v223_v16, %v222_v13  ;;  %v418_v26 = vpack.c.bf16 %v257_v22, %v256_v21  ;;  %v240_v27 = vld [vmem:[%s3641_s1 + $0x160] sm:$0xff]  ;;  %v241_v28 = vld [vmem:[%s3641_s1 + $0x168] sm:$0xff] }
  0x19   : > { %2388 = vmatprep.subr.msk.bf16.mxu0 %vm484_vm0, %v402_v8  ;;  %v411_v20 = vpack.c.bf16 %v243_v19, %v242_v18  ;;  %2395 = vmatprep.subr.msk.bf16.mxu1 %vm484_vm0, %v419_v17  ;;  %v206_v29 = vld [vmem:[%s3641_s1 + $0x50] sm:$0xff]  ;;  %v207_v30 = vld [vmem:[%s3641_s1 + $0x58] sm:$0xff]  ;;  %v410_v31 = vpack.c.bf16 %v241_v28, %v240_v27  ;;  %v220_v35 = vld [vmem:[%s3641_s1 + $0xc0] sm:$0xff] }
  0x1a   : > { %v254_v32 = vld [vmem:[%s3641_s1 + $0x1d0] sm:$0xff]  ;;  %v255_v33 = vld [vmem:[%s3641_s1 + $0x1d8] sm:$0xff]  ;;  %v393_v34 = vpack.c.bf16 %v207_v30, %v206_v29  ;;  %v221_v36 = vld [vmem:[%s3641_s1 + $0xc8] sm:$0xff] }
  0x1b   : > { %v558_v25 = vsel %vm484_vm0, %v411_v20, 0  ;;  %v555_v37 = vsel %vm484_vm0, %v410_v31, 0  ;;  %v417_v38 = vpack.c.bf16 %v255_v33, %v254_v32  ;;  %v194_v39 = vld [vmem:[%s192_s20] sm:$0xff]  ;;  %v238_v40 = vld [vmem:[%s3641_s1 + $0x150] sm:$0xff]  ;;  %v239_v41 = vld [vmem:[%s3641_s1 + $0x158] sm:$0xff]  ;;  %v400_v44 = vpack.c.bf16 %v221_v36, %v220_v35  ;;  %s2523_s20 = sshll.u32 %s2584_s14, 4  ;;  %s2524_s20 = int_to_ptr.vmem [resolvable:$false] %s2523_s20 }
  0x1c   : > { %2170 = vmatpush3.bf16.xpose.msra.mxu1 %v558_v25  ;;  %v2750_v42 = vpack.c.bf16 %v194_v39, %v194_v39  ;;  %v504_v43 = vsel %vm484_vm0, %v393_v34, 0  ;;  %v204_v45 = vld [vmem:[%s3641_s1 + $0x40] sm:$0xff]  ;;  %v205_v46 = vld [vmem:[%s3641_s1 + $0x48] sm:$0xff]  ;;  %v409_v47 = vpack.c.bf16 %v239_v41, %v238_v40  ;;  %v218_v51 = vld [vmem:[%s3641_s1 + $0xb0] sm:$0xff]  ;;  %s2525_s22 = scalar_lea.vmem %s2524_s20, 256 }
  0x1d   : > { %2396 = vmatprep.subr.msk.bf16.mxu1 %vm484_vm0, %v418_v26  ;;  %v252_v48 = vld [vmem:[%s3641_s1 + $0x1c0] sm:$0xff]  ;;  %v253_v49 = vld [vmem:[%s3641_s1 + $0x1c8] sm:$0xff]  ;;  %v392_v50 = vpack.c.bf16 %v205_v46, %v204_v45  ;;  %v219_v52 = vld [vmem:[%s3641_s1 + $0xb8] sm:$0xff] }
  0x1e   : > { %2167 = vmatprep.mubr.msk.bf16.mxu0 %vm484_vm0, %v2750_v42  ;;  %2185 = vmatprep.mubr.msk.bf16.mxu1 %vm484_vm0, %v2750_v42  ;;  %v552_v53 = vsel %vm484_vm0, %v409_v47, 0  ;;  %v416_v54 = vpack.c.bf16 %v253_v49, %v252_v48  ;;  %v236_v55 = vld [vmem:[%s3641_s1 + $0x140] sm:$0xff]  ;;  %v237_v56 = vld [vmem:[%s3641_s1 + $0x148] sm:$0xff]  ;;  %v399_v58 = vpack.c.bf16 %v219_v52, %v218_v51  ;;  %v202_v59 = vld [vmem:[%s3641_s1 + $0x30] sm:$0xff] }
  0x1f   : > { %v501_v57 = vsel %vm484_vm0, %v392_v50, 0  ;;  %v203_v60 = vld [vmem:[%s3641_s1 + $0x38] sm:$0xff]  ;;  %v408_v61 = vpack.c.bf16 %v237_v56, %v236_v55  ;;  %v250_v62 = vld [vmem:[%s3641_s1 + $0x1b0] sm:$0xff]  ;;  %v216_v1 = vld [vmem:[%s3641_s1 + $0xa0] sm:$0xff] }
  0x20   : > { %2154 = vmatpush3.bf16.xpose.msra.mxu0 %v507_v23  ;;  %v251_v63 = vld [vmem:[%s3641_s1 + $0x1b8] sm:$0xff]  ;;  %v391_v0 = vpack.c.bf16 %v203_v60, %v202_v59  ;;  %v217_v2 = vld [vmem:[%s3641_s1 + $0xa8] sm:$0xff]  ;;  %v234_v5 = vld [vmem:[%s3641_s1 + $0x130] sm:$0xff] }
  0x21   : > { %2389 = vmatprep.subr.msk.bf16.mxu0 %vm484_vm0, %v401_v24  ;;  %v549_v3 = vsel %vm484_vm0, %v408_v61, 0  ;;  %v415_v4 = vpack.c.bf16 %v251_v63, %v250_v62  ;;  %v235_v6 = vld [vmem:[%s3641_s1 + $0x138] sm:$0xff]  ;;  %v398_v8 = vpack.c.bf16 %v217_v2, %v216_v1  ;;  %v200_v9 = vld [vmem:[%s3641_s1 + $0x20] sm:$0xff]  ;;  %v201_v10 = vld [vmem:[%s3641_s1 + $0x28] sm:$0xff] }
  0x22   : > { %v498_v7 = vsel %vm484_vm0, %v391_v0, 0  ;;  %v407_v11 = vpack.c.bf16 %v235_v6, %v234_v5  ;;  %v248_v12 = vld [vmem:[%s3641_s1 + $0x1a0] sm:$0xff]  ;;  %v249_v13 = vld [vmem:[%s3641_s1 + $0x1a8] sm:$0xff]  ;;  %v390_v14 = vpack.c.bf16 %v201_v10, %v200_v9  ;;  %v214_v15 = vld [vmem:[%s3641_s1 + $0x90] sm:$0xff] }
  0x23   : > { %v215_v16 = vld [vmem:[%s3641_s1 + $0x98] sm:$0xff]  ;;  %v414_v18 = vpack.c.bf16 %v249_v13, %v248_v12  ;;  %v232_v19 = vld [vmem:[%s3641_s1 + $0x120] sm:$0xff]  ;;  %v233_v20 = vld [vmem:[%s3641_s1 + $0x128] sm:$0xff] }
  0x24   : > { %2172 = vmatpush3.bf16.xpose.msra.mxu1 %v555_v37  ;;  %v546_v17 = vsel %vm484_vm0, %v407_v11, 0  ;;  %v495_v21 = vsel %vm484_vm0, %v390_v14, 0  ;;  %v397_v22 = vpack.c.bf16 %v215_v16, %v214_v15  ;;  %v198_v23 = vld [vmem:[%s3641_s1 + $0x10] sm:$0xff]  ;;  %v199_v24 = vld [vmem:[%s3641_s1 + $0x18] sm:$0xff]  ;;  %v406_v25 = vpack.c.bf16 %v233_v20, %v232_v19  ;;  %v212_v29 = vld [vmem:[%s3641_s1 + $0x80] sm:$0xff] }
  0x25   : > { %2397 = vmatprep.subr.msk.bf16.mxu1 %vm484_vm0, %v417_v38  ;;  %v246_v26 = vld [vmem:[%s3641_s1 + $0x190] sm:$0xff]  ;;  %v247_v27 = vld [vmem:[%s3641_s1 + $0x198] sm:$0xff]  ;;  %v389_v28 = vpack.c.bf16 %v199_v24, %v198_v23  ;;  %v213_v30 = vld [vmem:[%s3641_s1 + $0x88] sm:$0xff] }
  0x26   : > { %v543_v31 = vsel %vm484_vm0, %v406_v25, 0  ;;  %v413_v32 = vpack.c.bf16 %v247_v27, %v246_v26  ;;  %v230_v33 = vld [vmem:[%s3641_s1 + $0x110] sm:$0xff]  ;;  %v231_v34 = vld [vmem:[%s3641_s1 + $0x118] sm:$0xff]  ;;  %v396_v36 = vpack.c.bf16 %v213_v30, %v212_v29  ;;  %v196_v37 = vld [vmem:[%s3641_s1] sm:$0xff] }
  0x27   : > { %v492_v35 = vsel %vm484_vm0, %v389_v28, 0  ;;  %v197_v38 = vld [vmem:[%s3641_s1 + $0x8] sm:$0xff]  ;;  %v405_v39 = vpack.c.bf16 %v231_v34, %v230_v33  ;;  %v244_v40 = vld [vmem:[%s3641_s1 + $0x180] sm:$0xff]  ;;  %v291_v45 = vld [vmem:[%s3641_s1 + $0x2f8] sm:$0xff] }
  0x28   : > { %2156 = vmatpush3.bf16.xpose.msra.mxu0 %v504_v43  ;;  %v245_v41 = vld [vmem:[%s3641_s1 + $0x188] sm:$0xff]  ;;  %v388_v43 = vpack.c.bf16 %v197_v38, %v196_v37  ;;  %v228_v48 = vld [vmem:[%s3641_s1 + $0x100] sm:$0xff]  ;;  %v274_v52 = vld [vmem:[%s3641_s1 + $0x270] sm:$0xff] }
  0x29   : > { %2390 = vmatprep.subr.msk.bf16.mxu0 %vm484_vm0, %v400_v44  ;;  %v290_v44 = vld [vmem:[%s3641_s1 + $0x2f0] sm:$0xff]  ;;  %v540_v46 = vsel %vm484_vm0, %v405_v39, 0  ;;  %v412_v47 = vpack.c.bf16 %v245_v41, %v244_v40  ;;  %v229_v49 = vld [vmem:[%s3641_s1 + $0x108] sm:$0xff]  ;;  %v323_v56 = vld [vmem:[%s3641_s1 + $0x3f8] sm:$0xff] }
  0x2a   : > { %v489_v50 = vsel %vm484_vm0, %v388_v43, 0  ;;  %v435_v51 = vpack.c.bf16 %v291_v45, %v290_v44  ;;  %v322_v55 = vld [vmem:[%s3641_s1 + $0x3f0] sm:$0xff]  ;;  %v289_v59 = vld [vmem:[%s3641_s1 + $0x2e8] sm:$0xff]  ;;  %v307_v63 = vld [vmem:[%s3641_s1 + $0x378] sm:$0xff] }
  0x2b   : > { %v451_v61 = vpack.c.bf16 %v323_v56, %v322_v55  ;;  %v306_v62 = vld [vmem:[%s3641_s1 + $0x370] sm:$0xff]  ;;  %v272_v2 = vld [vmem:[%s3641_s1 + $0x260] sm:$0xff]  ;;  %v321_v6 = vld [vmem:[%s3641_s1 + $0x3e8] sm:$0xff] }
  0x2c   : > { %2174 = vmatpush3.bf16.xpose.msra.mxu1 %v552_v53  ;;  %v275_v53 = vld [vmem:[%s3641_s1 + $0x278] sm:$0xff]  ;;  %v320_v5 = vld [vmem:[%s3641_s1 + $0x3e0] sm:$0xff]  ;;  %v305_v13 = vld [vmem:[%s3641_s1 + $0x368] sm:$0xff] }
  0x2d   : > { %2398 = vmatprep.subr.msk.bf16.mxu1 %vm484_vm0, %v416_v54  ;;  %v404_v54 = vpack.c.bf16 %v229_v49, %v228_v48  ;;  %v287_v9 = vld [vmem:[%s3641_s1 + $0x2d8] sm:$0xff]  ;;  %v450_v11 = vpack.c.bf16 %v321_v6, %v320_v5  ;;  %v304_v12 = vld [vmem:[%s3641_s1 + $0x360] sm:$0xff]  ;;  %v270_v16 = vld [vmem:[%s3641_s1 + $0x250] sm:$0xff] }
  0x2e   : > { %v318_v19 = vld [vmem:[%s3641_s1 + $0x3d0] sm:$0xff]  ;;  %v319_v20 = vld [vmem:[%s3641_s1 + $0x3d8] sm:$0xff]  ;;  %v285_v23 = vld [vmem:[%s3641_s1 + $0x2c8] sm:$0xff] }
  0x2f   : > { %v537_v60 = vsel %vm484_vm0, %v404_v54, 0  ;;  %v449_v25 = vpack.c.bf16 %v319_v20, %v318_v19  ;;  %v302_v26 = vld [vmem:[%s3641_s1 + $0x350] sm:$0xff]  ;;  %v303_v27 = vld [vmem:[%s3641_s1 + $0x358] sm:$0xff]  ;;  %v268_v30 = vld [vmem:[%s3641_s1 + $0x240] sm:$0xff] }
  0x30   : > { %2158 = vmatpush3.bf16.xpose.msra.mxu0 %v501_v57  ;;  %v427_v57 = vpack.c.bf16 %v275_v53, %v274_v52  ;;  %v316_v33 = vld [vmem:[%s3641_s1 + $0x3c0] sm:$0xff]  ;;  %v317_v34 = vld [vmem:[%s3641_s1 + $0x3c8] sm:$0xff]  ;;  %v283_v37 = vld [vmem:[%s3641_s1 + $0x2b8] sm:$0xff] }
  0x31   : > { %2391 = vmatprep.subr.msk.bf16.mxu0 %vm484_vm0, %v399_v58  ;;  %v288_v58 = vld [vmem:[%s3641_s1 + $0x2e0] sm:$0xff]  ;;  %v448_v39 = vpack.c.bf16 %v317_v34, %v316_v33  ;;  %v301_v41 = vld [vmem:[%s3641_s1 + $0x348] sm:$0xff]  ;;  %v266_v45 = vld [vmem:[%s3641_s1 + $0x230] sm:$0xff] }
  0x32   : > { %v606_v0 = vsel %vm484_vm0, %v427_v57, 0  ;;  %v434_v1 = vpack.c.bf16 %v289_v59, %v288_v58  ;;  %v300_v40 = vld [vmem:[%s3641_s1 + $0x340] sm:$0xff]  ;;  %v314_v48 = vld [vmem:[%s3641_s1 + $0x3b0] sm:$0xff]  ;;  %v315_v49 = vld [vmem:[%s3641_s1 + $0x3b8] sm:$0xff] }
  0x33   : > { %v281_v52 = vld [vmem:[%s3641_s1 + $0x2a8] sm:$0xff]  ;;  %v447_v54 = vpack.c.bf16 %v315_v49, %v314_v48  ;;  %v298_v55 = vld [vmem:[%s3641_s1 + $0x330] sm:$0xff]  ;;  %v299_v56 = vld [vmem:[%s3641_s1 + $0x338] sm:$0xff] }
  0x34   : > { %2176 = vmatpush3.bf16.xpose.msra.mxu1 %v549_v3  ;;  %v273_v3 = vld [vmem:[%s3641_s1 + $0x268] sm:$0xff]  ;;  %v264_v59 = vld [vmem:[%s3641_s1 + $0x220] sm:$0xff]  ;;  %v294_v19 = vld [vmem:[%s3641_s1 + $0x310] sm:$0xff] }
  0x35   : > { %2399 = vmatprep.subr.msk.bf16.mxu1 %vm484_vm0, %v415_v4  ;;  %v443_v4 = vpack.c.bf16 %v307_v63, %v306_v62  ;;  %v312_v62 = vld [vmem:[%s3641_s1 + $0x3a0] sm:$0xff]  ;;  %v313_v63 = vld [vmem:[%s3641_s1 + $0x3a8] sm:$0xff]  ;;  %v295_v20 = vld [vmem:[%s3641_s1 + $0x318] sm:$0xff] }
  0x36   : > { %v296_v5 = vld [vmem:[%s3641_s1 + $0x320] sm:$0xff]  ;;  %v297_v6 = vld [vmem:[%s3641_s1 + $0x328] sm:$0xff]  ;;  %v350_v49 = vld [vmem:[%s3641_s1 + $0x4d0] sm:$0xff] }
  0x37   : > { %v654_v10 = vsel %vm484_vm0, %v443_v4, 0  ;;  %v446_v4 = vpack.c.bf16 %v313_v63, %v312_v62  ;;  %v337_v48 = vld [vmem:[%s3641_s1 + $0x468] sm:$0xff] }
  0x38   : > { %2160 = vmatpush3.bf16.xpose.msra.mxu0 %v498_v7  ;;  %v426_v7 = vpack.c.bf16 %v273_v3, %v272_v2  ;;  %v279_v2 = vld [vmem:[%s3641_s1 + $0x298] sm:$0xff]  ;;  %v333_v62 = vld [vmem:[%s3641_s1 + $0x448] sm:$0xff] }
  0x39   : > { %2392 = vmatprep.subr.msk.bf16.mxu0 %vm484_vm0, %v398_v8  ;;  %v286_v8 = vld [vmem:[%s3641_s1 + $0x2d0] sm:$0xff] }
  0x3a   : > { %v603_v14 = vsel %vm484_vm0, %v426_v7, 0  ;;  %v433_v15 = vpack.c.bf16 %v287_v9, %v286_v8  ;;  %v262_v9 = vld [vmem:[%s3641_s1 + $0x210] sm:$0xff] }
  0x3c   : > { %2178 = vmatpush3.bf16.xpose.msra.mxu1 %v546_v17  ;;  %v271_v17 = vld [vmem:[%s3641_s1 + $0x258] sm:$0xff] }
  0x3d   : > { %2400 = vmatprep.subr.msk.bf16.mxu1 %vm484_vm0, %v414_v18  ;;  %v442_v18 = vpack.c.bf16 %v305_v13, %v304_v12  ;;  %v310_v12 = vld [vmem:[%s3641_s1 + $0x390] sm:$0xff]  ;;  %v311_v13 = vld [vmem:[%s3641_s1 + $0x398] sm:$0xff] }
  0x3f   : > { %v651_v24 = vsel %vm484_vm0, %v442_v18, 0  ;;  %v445_v18 = vpack.c.bf16 %v311_v13, %v310_v12  ;;  %v329_v12 = vld [vmem:[%s3641_s1 + $0x428] sm:$0xff] }
  0x40   : > { %2162 = vmatpush3.bf16.xpose.msra.mxu0 %v495_v21  ;;  %v425_v21 = vpack.c.bf16 %v271_v17, %v270_v16  ;;  %v277_v16 = vld [vmem:[%s3641_s1 + $0x288] sm:$0xff] }
  0x41   : > { %2393 = vmatprep.subr.msk.bf16.mxu0 %vm484_vm0, %v397_v22  ;;  %v284_v22 = vld [vmem:[%s3641_s1 + $0x2c0] sm:$0xff] }
  0x42   : > { %v600_v28 = vsel %vm484_vm0, %v425_v21, 0  ;;  %v432_v29 = vpack.c.bf16 %v285_v23, %v284_v22  ;;  %v260_v23 = vld [vmem:[%s3641_s1 + $0x200] sm:$0xff] }
  0x44   : > { %2180 = vmatpush3.bf16.xpose.msra.mxu1 %v543_v31  ;;  %v269_v31 = vld [vmem:[%s3641_s1 + $0x248] sm:$0xff] }
  0x45   : > { %2401 = vmatprep.subr.msk.bf16.mxu1 %vm484_vm0, %v413_v32  ;;  %v441_v32 = vpack.c.bf16 %v303_v27, %v302_v26  ;;  %v308_v26 = vld [vmem:[%s3641_s1 + $0x380] sm:$0xff]  ;;  %v309_v27 = vld [vmem:[%s3641_s1 + $0x388] sm:$0xff] }
  0x47   : > { %v648_v38 = vsel %vm484_vm0, %v441_v32, 0  ;;  %v293_v32 = vld [vmem:[%s3641_s1 + $0x308] sm:$0xff] }
  0x48   : > { %2164 = vmatpush3.bf16.xpose.msra.mxu0 %v492_v35  ;;  %v424_v35 = vpack.c.bf16 %v269_v31, %v268_v30  ;;  %v444_v30 = vpack.c.bf16 %v309_v27, %v308_v26  ;;  %v292_v31 = vld [vmem:[%s3641_s1 + $0x300] sm:$0xff]  ;;  %v325_v26 = vld [vmem:[%s3641_s1 + $0x408] sm:$0xff] }
  0x49   : > { %2394 = vmatprep.subr.msk.bf16.mxu0 %vm484_vm0, %v396_v36  ;;  %v282_v36 = vld [vmem:[%s3641_s1 + $0x2b0] sm:$0xff]  ;;  %v436_v34 = vpack.c.bf16 %v293_v32, %v292_v31 }
  0x4a   : > { %v597_v43 = vsel %vm484_vm0, %v424_v35, 0  ;;  %v431_v44 = vpack.c.bf16 %v283_v37, %v282_v36  ;;  %v354_v36 = vld [vmem:[%s3641_s1 + $0x4f0] sm:$0xff]  ;;  %v355_v37 = vld [vmem:[%s3641_s1 + $0x4f8] sm:$0xff] }
  0x4b   : > { %v633_v35 = vsel %vm484_vm0, %v436_v34, 0 }
  0x4c   : > { %2182 = vmatpush3.bf16.xpose.msra.mxu1 %v540_v46  ;;  %v267_v46 = vld [vmem:[%s3641_s1 + $0x238] sm:$0xff] }
  0x4d   : > { %2402 = vmatprep.subr.msk.bf16.mxu1 %vm484_vm0, %v412_v47  ;;  %v440_v47 = vpack.c.bf16 %v301_v41, %v300_v40  ;;  %v339_v40 = vld [vmem:[%s3641_s1 + $0x478] sm:$0xff] }
  0x4f   : > { %v645_v53 = vsel %vm484_vm0, %v440_v47, 0 }
  0x50   : > { %2166 = vmatpush3.bf16.xpose.msra.mxu0 %v489_v50  ;;  %v423_v50 = vpack.c.bf16 %v267_v46, %v266_v45  ;;  %v353_v45 = vld [vmem:[%s3641_s1 + $0x4e8] sm:$0xff]  ;;  %v336_v46 = vld [vmem:[%s3641_s1 + $0x460] sm:$0xff] }
  0x51   : > { %2403 = vmatprep.subr.msk.bf16.mxu0 %vm484_vm0, %v435_v51  ;;  %v280_v51 = vld [vmem:[%s3641_s1 + $0x2a0] sm:$0xff] }
  0x52   : > { %v594_v57 = vsel %vm484_vm0, %v423_v50, 0  ;;  %v430_v58 = vpack.c.bf16 %v281_v52, %v280_v51  ;;  %v351_v50 = vld [vmem:[%s3641_s1 + $0x4d8] sm:$0xff]  ;;  %v458_v51 = vpack.c.bf16 %v337_v48, %v336_v46 }
  0x54   : > { %2184 = vmatpush3.bf16.xpose.msra.mxu1 %v537_v60  ;;  %v265_v60 = vld [vmem:[%s3641_s1 + $0x228] sm:$0xff]  ;;  %v699_v52 = vsel %vm484_vm0, %v458_v51, 0 }
  0x55   : > { %2411 = vmatprep.subr.msk.bf16.mxu1 %vm484_vm0, %v451_v61  ;;  %v439_v61 = vpack.c.bf16 %v299_v56, %v298_v55  ;;  %v335_v55 = vld [vmem:[%s3641_s1 + $0x458] sm:$0xff] }
  0x57   : > { %2168 = vmatmul.mubr.msk.bf16.vlgmr.msra.gmra.mxu0 %vm484_vm0, %v2750_v42  ;;  %v642_v3 = vsel %vm484_vm0, %v439_v61, 0  ;;  %v332_v61 = vld [vmem:[%s3641_s1 + $0x440] sm:$0xff] }
  0x58   : > { %2188 = vmatpush3.bf16.xpose.msra.mxu0 %v606_v0  ;;  %2203 = vmatprep.mubr.msk.bf16.mxu0 %vm484_vm0, %v2750_v42  ;;  %v422_v0 = vpack.c.bf16 %v265_v60, %v264_v59  ;;  %v456_v63 = vpack.c.bf16 %v333_v62, %v332_v61 }
  0x59   : > { %2404 = vmatprep.subr.msk.bf16.mxu0 %vm484_vm0, %v434_v1  ;;  %v278_v1 = vld [vmem:[%s3641_s1 + $0x290] sm:$0xff] }
  0x5a   : > { %v591_v7 = vsel %vm484_vm0, %v422_v0, 0  ;;  %v429_v8 = vpack.c.bf16 %v279_v2, %v278_v1  ;;  %v346_v0 = vld [vmem:[%s3641_s1 + $0x4b0] sm:$0xff]  ;;  %v347_v1 = vld [vmem:[%s3641_s1 + $0x4b8] sm:$0xff]  ;;  %v693_v2 = vsel %vm484_vm0, %v456_v63, 0 }
  0x5b   : > { %2186 = vmatmul.mubr.msk.bf16.vlgmr.msra.gmra.mxu1 %vm484_vm0, %v2750_v42 }
  0x5c   : > { %2206 = vmatpush3.bf16.xpose.msra.mxu1 %v654_v10  ;;  %2221 = vmatprep.mubr.msk.bf16.mxu1 %vm484_vm0, %v2750_v42  ;;  %v263_v10 = vld [vmem:[%s3641_s1 + $0x218] sm:$0xff] }
  0x5d   : > { %2412 = vmatprep.subr.msk.bf16.mxu1 %vm484_vm0, %v450_v11  ;;  %v438_v11 = vpack.c.bf16 %v297_v6, %v296_v5  ;;  %v331_v5 = vld [vmem:[%s3641_s1 + $0x438] sm:$0xff] }
  0x5f   : > { %v639_v17 = vsel %vm484_vm0, %v438_v11, 0  ;;  %v328_v11 = vld [vmem:[%s3641_s1 + $0x420] sm:$0xff] }
  0x60   : > { %2190 = vmatpush3.bf16.xpose.msra.mxu0 %v603_v14  ;;  %v421_v14 = vpack.c.bf16 %v263_v10, %v262_v9  ;;  %v454_v13 = vpack.c.bf16 %v329_v12, %v328_v11 }
  0x61   : > { %2405 = vmatprep.subr.msk.bf16.mxu0 %vm484_vm0, %v433_v15  ;;  %v276_v15 = vld [vmem:[%s3641_s1 + $0x280] sm:$0xff] }
  0x62   : > { %v588_v21 = vsel %vm484_vm0, %v421_v14, 0  ;;  %v428_v22 = vpack.c.bf16 %v277_v16, %v276_v15  ;;  %v342_v14 = vld [vmem:[%s3641_s1 + $0x490] sm:$0xff]  ;;  %v343_v15 = vld [vmem:[%s3641_s1 + $0x498] sm:$0xff]  ;;  %v687_v16 = vsel %vm484_vm0, %v454_v13, 0 }
  0x63   : > { %v382_v13 = vld [vmem:[%s3641_s1 + $0x5d0] sm:$0xff] }
  0x64   : > { %2208 = vmatpush3.bf16.xpose.msra.mxu1 %v651_v24  ;;  %v261_v24 = vld [vmem:[%s3641_s1 + $0x208] sm:$0xff] }
  0x65   : > { %2413 = vmatprep.subr.msk.bf16.mxu1 %vm484_vm0, %v449_v25  ;;  %v437_v25 = vpack.c.bf16 %v295_v20, %v294_v19  ;;  %v327_v19 = vld [vmem:[%s3641_s1 + $0x418] sm:$0xff] }
  0x68   : > { %2192 = vmatpush3.bf16.xpose.msra.mxu0 %v600_v28  ;;  %v420_v28 = vpack.c.bf16 %v261_v24, %v260_v23 }
  0x69   : > { %2406 = vmatprep.subr.msk.bf16.mxu0 %vm484_vm0, %v432_v29  ;;  %v636_v29 = vsel %vm484_vm0, %v437_v25, 0  ;;  %v324_v25 = vld [vmem:[%s3641_s1 + $0x400] sm:$0xff] }
  0x6a   : > { %v585_v33 = vsel %vm484_vm0, %v420_v28, 0  ;;  %v452_v27 = vpack.c.bf16 %v325_v26, %v324_v25  ;;  %v365_v25 = vld [vmem:[%s3641_s1 + $0x548] sm:$0xff] }
  0x6c   : > { %2210 = vmatpush3.bf16.xpose.msra.mxu1 %v648_v38  ;;  %v338_v38 = vld [vmem:[%s3641_s1 + $0x470] sm:$0xff]  ;;  %v681_v28 = vsel %vm484_vm0, %v452_v27, 0 }
  0x6d   : > { %2414 = vmatprep.subr.msk.bf16.mxu1 %vm484_vm0, %v448_v39  ;;  %v467_v39 = vpack.c.bf16 %v355_v37, %v354_v36  ;;  %v459_v41 = vpack.c.bf16 %v339_v40, %v338_v38  ;;  %v378_v27 = vld [vmem:[%s3641_s1 + $0x5b0] sm:$0xff] }
  0x70   : > { %2194 = vmatpush3.bf16.xpose.msra.mxu0 %v597_v43  ;;  %v702_v43 = vsel %vm484_vm0, %v459_v41, 0 }
  0x71   : > { %2407 = vmatprep.subr.msk.bf16.mxu0 %vm484_vm0, %v431_v44  ;;  %v352_v44 = vld [vmem:[%s3641_s1 + $0x4e0] sm:$0xff] }
  0x72   : > { %v466_v47 = vpack.c.bf16 %v353_v45, %v352_v44 }
  0x74   : > { %2212 = vmatpush3.bf16.xpose.msra.mxu1 %v645_v53  ;;  %v465_v53 = vpack.c.bf16 %v351_v50, %v350_v49 }
  0x75   : > { %2415 = vmatprep.subr.msk.bf16.mxu1 %vm484_vm0, %v447_v54  ;;  %v334_v54 = vld [vmem:[%s3641_s1 + $0x450] sm:$0xff] }
  0x76   : > { %v457_v56 = vpack.c.bf16 %v335_v55, %v334_v54 }
  0x78   : > { %2196 = vmatpush3.bf16.xpose.msra.mxu0 %v594_v57  ;;  %v348_v57 = vld [vmem:[%s3641_s1 + $0x4c0] sm:$0xff]  ;;  %v696_v59 = vsel %vm484_vm0, %v457_v56, 0 }
  0x79   : > { %2408 = vmatprep.subr.msk.bf16.mxu0 %vm484_vm0, %v430_v58  ;;  %v349_v58 = vld [vmem:[%s3641_s1 + $0x4c8] sm:$0xff] }
  0x7a   : > { %v464_v60 = vpack.c.bf16 %v349_v58, %v348_v57 }
  0x7c   : > { %2214 = vmatpush3.bf16.xpose.msra.mxu1 %v642_v3  ;;  %v463_v3 = vpack.c.bf16 %v347_v1, %v346_v0  ;;  %v386_v0 = vld [vmem:[%s3641_s1 + $0x5f0] sm:$0xff]  ;;  %v387_v1 = vld [vmem:[%s3641_s1 + $0x5f8] sm:$0xff] }
  0x7d   : > { %2416 = vmatprep.subr.msk.bf16.mxu1 %vm484_vm0, %v446_v4  ;;  %v330_v4 = vld [vmem:[%s3641_s1 + $0x430] sm:$0xff] }
  0x7e   : > { %v455_v6 = vpack.c.bf16 %v331_v5, %v330_v4  ;;  %v371_v4 = vld [vmem:[%s3641_s1 + $0x578] sm:$0xff]  ;;  %v384_v5 = vld [vmem:[%s3641_s1 + $0x5e0] sm:$0xff] }
  0x80   : > { %2198 = vmatpush3.bf16.xpose.msra.mxu0 %v591_v7  ;;  %v344_v7 = vld [vmem:[%s3641_s1 + $0x4a0] sm:$0xff]  ;;  %v690_v9 = vsel %vm484_vm0, %v455_v6, 0  ;;  %v385_v6 = vld [vmem:[%s3641_s1 + $0x5e8] sm:$0xff] }
  0x81   : > { %2409 = vmatprep.subr.msk.bf16.mxu0 %vm484_vm0, %v429_v8  ;;  %v345_v8 = vld [vmem:[%s3641_s1 + $0x4a8] sm:$0xff] }
  0x82   : > { %v462_v10 = vpack.c.bf16 %v345_v8, %v344_v7  ;;  %v482_v8 = vpack.c.bf16 %v385_v6, %v384_v5 }
  0x84   : > { %2216 = vmatpush3.bf16.xpose.msra.mxu1 %v639_v17  ;;  %v461_v17 = vpack.c.bf16 %v343_v15, %v342_v14  ;;  %v383_v14 = vld [vmem:[%s3641_s1 + $0x5d8] sm:$0xff] }
  0x85   : > { %2417 = vmatprep.subr.msk.bf16.mxu1 %vm484_vm0, %v445_v18  ;;  %v326_v18 = vld [vmem:[%s3641_s1 + $0x410] sm:$0xff] }
  0x86   : > { %v453_v20 = vpack.c.bf16 %v327_v19, %v326_v18  ;;  %v367_v18 = vld [vmem:[%s3641_s1 + $0x558] sm:$0xff] }
  0x88   : > { %2200 = vmatpush3.bf16.xpose.msra.mxu0 %v588_v21  ;;  %v340_v21 = vld [vmem:[%s3641_s1 + $0x480] sm:$0xff]  ;;  %v684_v23 = vsel %vm484_vm0, %v453_v20, 0 }
  0x89   : > { %2410 = vmatprep.subr.msk.bf16.mxu0 %vm484_vm0, %v428_v22  ;;  %v341_v22 = vld [vmem:[%s3641_s1 + $0x488] sm:$0xff]  ;;  %v380_v20 = vld [vmem:[%s3641_s1 + $0x5c0] sm:$0xff] }
  0x8a   : > { %v460_v24 = vpack.c.bf16 %v341_v22, %v340_v21  ;;  %v381_v21 = vld [vmem:[%s3641_s1 + $0x5c8] sm:$0xff] }
  0x8c   : > { %2218 = vmatpush3.bf16.xpose.msra.mxu1 %v636_v29  ;;  %v2581_v29 = vmov 0.0  }
  0x8d   : > { %2418 = vmatprep.subr.msk.bf16.mxu1 %vm484_vm0, %v444_v30 }
  0x90   : > { %2202 = vmatpush3.bf16.xpose.msra.mxu0 %v585_v33 }
  0x91   : > { %2419 = vmatprep.subr.msk.bf16.mxu0 %vm484_vm0, %v467_v39 }
  0x94   : > { %2220 = vmatpush3.bf16.xpose.msra.mxu1 %v633_v35 }
  0x97   : > { %2204 = vmatmul.mubr.msk.bf16.vlgmr.msra.gmra.mxu0 %vm484_vm0, %v2750_v42 }
  0x98   : > { %2239 = vmatprep.mubr.msk.bf16.mxu0 %vm484_vm0, %v2750_v42  ;;  %2224 = vmatpush3.bf16.xpose.msra.mxu0 %v702_v43 }
  0x99   : > { %2420 = vmatprep.subr.msk.bf16.mxu0 %vm484_vm0, %v466_v47 }
  0x9b   : > { %2222 = vmatmul.mubr.msk.bf16.vlgmr.msra.gmra.mxu1 %vm484_vm0, %v2750_v42 }
  0x9c   : > { %2257 = vmatprep.mubr.msk.bf16.mxu1 %vm484_vm0, %v2750_v42 }
  0xa0   : > { %2226 = vmatpush3.bf16.xpose.msra.mxu0 %v699_v52 }
  0xa1   : > { %2421 = vmatprep.subr.msk.bf16.mxu0 %vm484_vm0, %v465_v53 }
  0xa8   : > { %2228 = vmatpush3.bf16.xpose.msra.mxu0 %v696_v59 }
  0xa9   : > { %2422 = vmatprep.subr.msk.bf16.mxu0 %vm484_vm0, %v464_v60 }
  0xb0   : > { %2230 = vmatpush3.bf16.xpose.msra.mxu0 %v693_v2  ;;  %v370_v2 = vld [vmem:[%s3641_s1 + $0x570] sm:$0xff] }
  0xb1   : > { %2423 = vmatprep.subr.msk.bf16.mxu0 %vm484_vm0, %v463_v3  ;;  %v483_v3 = vpack.c.bf16 %v387_v1, %v386_v0  ;;  %v475_v7 = vpack.c.bf16 %v371_v4, %v370_v2  ;;  %v356_v2 = vld [vmem:[%s3641_s1 + $0x500] sm:$0xff] }
  0xb3   : > { %2427 = vmatprep.subr.msk.bf16.mxu1 %vm484_vm0, %v483_v3  ;;  %v750_v11 = vsel %vm484_vm0, %v475_v7, 0  ;;  %v357_v3 = vld [vmem:[%s3641_s1 + $0x508] sm:$0xff] }
  0xb4   : > { %2242 = vmatpush3.bf16.xpose.msra.mxu1 %v750_v11  ;;  %v468_v5 = vpack.c.bf16 %v357_v3, %v356_v2 }
  0xb5   : > { %2428 = vmatprep.subr.msk.bf16.mxu1 %vm484_vm0, %v482_v8 }
  0xb6   : > { %v729_v6 = vsel %vm484_vm0, %v468_v5, 0 }
  0xb8   : > { %2232 = vmatpush3.bf16.xpose.msra.mxu0 %v690_v9  ;;  %v368_v9 = vld [vmem:[%s3641_s1 + $0x560] sm:$0xff] }
  0xb9   : > { %2424 = vmatprep.subr.msk.bf16.mxu0 %vm484_vm0, %v462_v10  ;;  %v369_v10 = vld [vmem:[%s3641_s1 + $0x568] sm:$0xff] }
  0xba   : > { %v474_v12 = vpack.c.bf16 %v369_v10, %v368_v9 }
  0xbc   : > { %v747_v15 = vsel %vm484_vm0, %v474_v12, 0 }
  0xbd   : > { %2244 = vmatpush3.bf16.xpose.msra.mxu1 %v747_v15 }
  0xc0   : > { %2234 = vmatpush3.bf16.xpose.msra.mxu0 %v687_v16  ;;  %v481_v16 = vpack.c.bf16 %v383_v14, %v382_v13 }
  0xc1   : > { %2425 = vmatprep.subr.msk.bf16.mxu0 %vm484_vm0, %v461_v17  ;;  %v366_v17 = vld [vmem:[%s3641_s1 + $0x550] sm:$0xff] }
  0xc2   : > { %2429 = vmatprep.subr.msk.bf16.mxu1 %vm484_vm0, %v481_v16  ;;  %v473_v19 = vpack.c.bf16 %v367_v18, %v366_v17 }
  0xc4   : > { %v744_v22 = vsel %vm484_vm0, %v473_v19, 0 }
  0xc5   : > { %2246 = vmatpush3.bf16.xpose.msra.mxu1 %v744_v22 }
  0xc8   : > { %2236 = vmatpush3.bf16.xpose.msra.mxu0 %v684_v23  ;;  %v480_v23 = vpack.c.bf16 %v381_v21, %v380_v20 }
  0xc9   : > { %2426 = vmatprep.subr.msk.bf16.mxu0 %vm484_vm0, %v460_v24  ;;  %v364_v24 = vld [vmem:[%s3641_s1 + $0x540] sm:$0xff] }
  0xca   : > { %2430 = vmatprep.subr.msk.bf16.mxu1 %vm484_vm0, %v480_v23  ;;  %v472_v26 = vpack.c.bf16 %v365_v25, %v364_v24 }
  0xd0   : > { %2238 = vmatpush3.bf16.xpose.msra.mxu0 %v681_v28  ;;  %v379_v28 = vld [vmem:[%s3641_s1 + $0x5b8] sm:$0xff] }
  0xd1   : > { %2291 = vmatprep.subr.bf16.mxu0 %v2581_v29 }
  0xd7   : > { %2240 = vmatmul.mubr.msk.bf16.vlgmr.msra.gmra.mxu0 %vm484_vm0, %v2750_v42 }
  0xd8   : > { %2293 = vmatprep.mubr.msk.bf16.mxu0 %vm2582_vm1, %v2581_v29 }
 0x117   : > { %v810_v30 = vpop.f32.mrf.mxu0 }
 0x118   : > { %v1022_v39 = vmul.f32 0.125, %v810_v30  ;;  %v741_v30 = vsel %vm484_vm0, %v472_v26, 0 }
 0x119   : > { %v812_v31 = vpop.f32.mrf.mxu0  ;;  %2248 = vmatpush3.bf16.xpose.msra.mxu1 %v741_v30 }
 0x11a   : > { %v1023_v43 = vmul.f32 0.125, %v812_v31  ;;  %v1026_v47 = vpack.c.bf16 %v1022_v39, %v1022_v39  ;;  %v479_v31 = vpack.c.bf16 %v379_v28, %v378_v27  ;;  %v360_v39 = vld [vmem:[%s3641_s1 + $0x520] sm:$0xff] }
 0x11b   : > { %v814_v32 = vpop.f32.mrf.mxu0  ;;  %v851_v34 = vpop.f32.mrf.mxu1 }
 0x11c   : > { %v3257_v50 = vpack.c.bf16 %v1023_v43, %v1023_v43  ;;  %v1024_v51 = vmul.f32 0.125, %v851_v34  ;;  %v362_v32 = vld [vmem:[%s3641_s1 + $0x530] sm:$0xff]  ;;  %2431 = vmatprep.subr.msk.bf16.mxu1 %vm484_vm0, %v479_v31 }
 0x11d   : > { %v815_v33 = vpop.f32.mrf.mxu0  ;;  %v853_v35 = vpop.f32.mrf.mxu1 }
 0x11e   : > { %v3264_v55 = vpack.c.bf16 %v1024_v51, %v1024_v51  ;;  %v1025_v56 = vmul.f32 0.125, %v853_v35  ;;  %v363_v33 = vld [vmem:[%s3641_s1 + $0x538] sm:$0xff]  ;;  %v376_v35 = vld [vmem:[%s3641_s1 + $0x5a0] sm:$0xff]  ;;  %v358_v51 = vld [vmem:[%s3641_s1 + $0x510] sm:$0xff] }
 0x11f   : > { %v855_v36 = vpop.f32.mrf.mxu1  ;;  %v471_v34 = vpack.c.bf16 %v363_v33, %v362_v32 }
 0x120   : > { %v3275_v59 = vpack.c.bf16 %v1025_v56, %v1025_v56  ;;  %v377_v36 = vld [vmem:[%s3641_s1 + $0x5a8] sm:$0xff] }
 0x121   : > { %v856_v37 = vpop.f32.mrf.mxu1 }
 0x122   : > { %v738_v37 = vsel %vm484_vm0, %v471_v34, 0 }
 0x123   : > { %2250 = vmatpush3.bf16.xpose.msra.mxu1 %v738_v37 }
 0x157   : > { %v892_v38 = vpop.f32.mrf.mxu0 }
 0x158   : > { %v1027_v40 = vpack.c.bf16 %v892_v38, %v892_v38  ;;  %v478_v38 = vpack.c.bf16 %v377_v36, %v376_v35 }
 0x159   : > { %v894_v41 = vpop.f32.mrf.mxu0 }
 0x15a   : > { %v1034_v44 = vsel %vm1029_vm2, %v1027_v40, 0  ;;  %v3251_v45 = vpack.c.bf16 %v894_v41, %v894_v41  ;;  %1140 = vrot.lane.b32.xlu0 %v1027_v40, %s2583_s29  ;;  %v361_v40 = vld [vmem:[%s3641_s1 + $0x528] sm:$0xff]  ;;  %2432 = vmatprep.subr.msk.bf16.mxu1 %vm484_vm0, %v478_v38 }
 0x15b   : > { %v896_v46 = vpop.f32.mrf.mxu0  ;;  %2292 = vmatpush3.bf16.xpose.msra.mxu0 %v1034_v44  ;;  %v933_v49 = vpop.f32.mrf.mxu1  ;;  %v470_v44 = vpack.c.bf16 %v361_v40, %v360_v39 }
 0x15c   : > { %1360 = vrot.lane.b32.xlu1 %v3251_v45, %s2583_s29  ;;  %2303 = vmatprep.subr.bf16.mxu0 %v2581_v29  ;;  %v3260_v52 = vpack.c.bf16 %v933_v49, %v933_v49  ;;  %v374_v46 = vld [vmem:[%s3641_s1 + $0x590] sm:$0xff]  ;;  %v1256_v56 = vsel %vm1029_vm2, %v3251_v45, 0  ;;  %v373_v45 = vld [vmem:[%s3641_s1 + $0x588] sm:$0xff] }
 0x15d   : > { %v897_v48 = vpop.f32.mrf.mxu0  ;;  %v935_v53 = vpop.f32.mrf.mxu1 }
 0x15e   : > { %1137 = vrot.lane.b32.xlu0 %v1026_v47, %s2583_s29  ;;  %v3269_v57 = vpack.c.bf16 %v935_v53, %v935_v53  ;;  %v735_v48 = vsel %vm484_vm0, %v470_v44, 0  ;;  %v359_v53 = vld [vmem:[%s3641_s1 + $0x518] sm:$0xff]  ;;  %v1476_v8 = vsel %vm1029_vm2, %v3260_v52, 0 }
 0x15f   : > { %v937_v54 = vpop.f32.mrf.mxu1  ;;  %2252 = vmatpush3.bf16.xpose.msra.mxu1 %v735_v48 }
 0x160   : > { %1357 = vrot.lane.b32.xlu1 %v3257_v50, %s2583_s29  ;;  %v1696_v11 = vsel %vm1029_vm2, %v3269_v57, 0 }
 0x161   : > { %v938_v58 = vpop.f32.mrf.mxu1 }
 0x162   : > { %2294 = vmatmul.mubr.msk.bf16.vlgmr.msra.gmra.mxu0 %vm1029_vm2, %v1026_v47  ;;  %1580 = vrot.lane.b32.xlu0 %v3260_v52, %s2583_s29  ;;  %v375_v47 = vld [vmem:[%s3641_s1 + $0x598] sm:$0xff]  ;;  %v469_v58 = vpack.c.bf16 %v359_v53, %v358_v51 }
 0x163   : > { %2305 = vmatprep.mubr.msk.bf16.mxu0 %vm2582_vm1, %v2581_v29  ;;  %v477_v49 = vpack.c.bf16 %v375_v47, %v374_v46 }
 0x164   : > { %1577 = vrot.lane.b32.xlu1 %v3264_v55, %s2583_s29  ;;  %v732_v0 = vsel %vm484_vm0, %v469_v58, 0 }
 0x165   : > { %2433 = vmatprep.subr.msk.bf16.mxu1 %vm484_vm0, %v477_v49 }
 0x166   : > { %1800 = vrot.lane.b32.xlu0 %v3269_v57, %s2583_s29 }
 0x167   : > { %2254 = vmatpush3.bf16.xpose.msra.mxu1 %v732_v0 }
 0x168   : > { %1797 = vrot.lane.b32.xlu1 %v3275_v59, %s2583_s29 }
 0x197   : > { %v3281_v60 = vpop.f32.mrf.mxu0 }
 0x199   : > { %v3283_v61 = vpop.f32.mrf.mxu0 }
 0x19b   : > { %v978_v62 = vpop.f32.mrf.mxu0 }
 0x19c   : > { %v372_v62 = vld [vmem:[%s3641_s1 + $0x580] sm:$0xff] }
 0x19d   : > { %v979_v63 = vpop.f32.mrf.mxu0  ;;  %v476_v1 = vpack.c.bf16 %v373_v45, %v372_v62 }
 0x19f   : > { %2434 = vmatprep.subr.msk.bf16.mxu1 %vm484_vm0, %v476_v1 }
 0x1a0   : > { %2256 = vmatpush3.bf16.xpose.msra.mxu1 %v729_v6 }
 0x1a1   : > { %2297 = vmatprep.subr.bf16.mxu1 %v2581_v29 }
 0x1a7   : > { %2258 = vmatmul.mubr.msk.bf16.vlgmr.msra.gmra.mxu1 %vm484_vm0, %v2750_v42 }
 0x1a8   : > { %2299 = vmatprep.mubr.msk.bf16.mxu1 %vm2582_vm1, %v2581_v29 }
 0x1cc   : > { %v1141_v41 = vpop.permute.xlu0 %1140 }
 0x1cd   : > { %v1146_v43 = vsel %vm1029_vm2, %v1141_v41, 0 }
 0x1ce   : > { %2304 = vmatpush3.bf16.xpose.msra.mxu0 %v1146_v43  ;;  %v1361_v63 = vpop.permute.xlu1 %1360 }
 0x1cf   : > { %2315 = vmatprep.subr.bf16.mxu0 %v2581_v29  ;;  %v1366_v4 = vsel %vm1029_vm2, %v1361_v63, 0 }
 0x1d0   : > { %v1138_v54 = vpop.permute.xlu0 %1137 }
 0x1d2   : > { %v1358_v7 = vpop.permute.xlu1 %1357 }
 0x1d4   : > { %v1581_v9 = vpop.permute.xlu0 %1580 }
 0x1d5   : > { %2306 = vmatmul.mubr.msk.bf16.vlgmr.msra.gmra.mxu0 %vm1029_vm2, %v1138_v54  ;;  %v1586_v10 = vsel %vm1029_vm2, %v1581_v9, 0 }
 0x1d6   : > { %2316 = vmatpush3.bf16.xpose.msra.mxu0 %v1256_v56  ;;  %2317 = vmatprep.mubr.msk.bf16.mxu0 %vm2582_vm1, %v2581_v29 }
 0x1d7   : > { %2327 = vmatprep.subr.bf16.mxu0 %v2581_v29 }
 0x1d8   : > { %v1801_v42 = vpop.permute.xlu0 %1800 }
 0x1dd   : > { %2318 = vmatmul.mubr.msk.bf16.vlgmr.msra.gmra.mxu0 %vm1029_vm2, %v3257_v50  ;;  %v3418_v50 = vpack.c.bf16 %v3281_v60, %v3281_v60  ;;  %v1578_v60 = vpop.permute.xlu1 %1577 }
 0x1de   : > { %2328 = vmatpush3.bf16.xpose.msra.mxu0 %v1366_v4  ;;  %2329 = vmatprep.mubr.msk.bf16.mxu0 %vm2582_vm1, %v2581_v29 }
 0x1df   : > { %2339 = vmatprep.subr.bf16.mxu0 %v2581_v29  ;;  %v1094_v52 = vsel %vm1092_vm3, %v3418_v50, 0 }
 0x1e0   : > { %2298 = vmatpush3.bf16.msra.mxu1 %v1094_v52 }
 0x1e1   : > { %2309 = vmatprep.subr.bf16.mxu1 %v2581_v29  ;;  %v1798_v12 = vpop.permute.xlu1 %1797 }
 0x1e5   : > { %2330 = vmatmul.mubr.msk.bf16.vlgmr.msra.gmra.mxu0 %vm1029_vm2, %v1358_v7 }
 0x1e6   : > { %2340 = vmatpush3.bf16.xpose.msra.mxu0 %v1476_v8  ;;  %2341 = vmatprep.mubr.msk.bf16.mxu0 %vm2582_vm1, %v2581_v29 }
 0x1e7   : > { %2351 = vmatprep.subr.bf16.mxu0 %v2581_v29 }
 0x1ed   : > { %2342 = vmatmul.mubr.msk.bf16.vlgmr.msra.gmra.mxu0 %vm1029_vm2, %v3264_v55  ;;  %v1806_v55 = vsel %vm1029_vm2, %v1801_v42, 0 }
 0x1ee   : > { %2352 = vmatpush3.bf16.xpose.msra.mxu0 %v1586_v10  ;;  %2353 = vmatprep.mubr.msk.bf16.mxu0 %vm2582_vm1, %v2581_v29 }
 0x1ef   : > { %2363 = vmatprep.subr.bf16.mxu0 %v2581_v29 }
 0x1f5   : > { %2354 = vmatmul.mubr.msk.bf16.vlgmr.msra.gmra.mxu0 %vm1029_vm2, %v1578_v60 }
 0x1f6   : > { %2364 = vmatpush3.bf16.xpose.msra.mxu0 %v1696_v11  ;;  %2365 = vmatprep.mubr.msk.bf16.mxu0 %vm2582_vm1, %v2581_v29 }
 0x1f7   : > { %2375 = vmatprep.subr.bf16.mxu0 %v2581_v29 }
 0x1fd   : > { %2366 = vmatmul.mubr.msk.bf16.vlgmr.msra.gmra.mxu0 %vm1029_vm2, %v3275_v59 }
 0x1fe   : > { %2376 = vmatpush3.bf16.xpose.msra.mxu0 %v1806_v55  ;;  %2377 = vmatprep.mubr.msk.bf16.mxu0 %vm2582_vm1, %v2581_v29 }
 0x205   : > { %2378 = vmatmul.mubr.msk.bf16.vlgmr.msra.gmra.mxu0 %vm1029_vm2, %v1798_v12 }
 0x222   : > { %v1070_v57 = vpop.f32.mrf.mxu0 }
 0x223   : > { %v1077_v13 = vsel %vm1076_vm4, %v1070_v57, -inf }
 0x224   : > { %1078 = vmax.xlane.f32.xlu0 %v1077_v13  ;;  %v2295_v14 = vpop.f32.mrf.mxu0 }
 0x226   : > { %v1073_v15 = vpop.f32.mrf.mxu0 }
 0x228   : > { %v2296_v16 = vpop.f32.mrf.mxu0 }
 0x267   : > { %v1015_v1 = vpop.f32.mrf.mxu1 }
 0x269   : > { %v1017_v2 = vpop.f32.mrf.mxu1 }
 0x26b   : > { %v1019_v3 = vpop.f32.mrf.mxu1 }
 0x26d   : > { %v1020_v4 = vpop.f32.mrf.mxu1 }
 0x295   : > { %v1182_v17 = vpop.f32.mrf.mxu0 }
 0x296   : > { %v1188_v18 = vsel %vm1076_vm4, %v1182_v17, -inf }
 0x297   : > { %1189 = vmax.xlane.f32.xlu1 %v1188_v18  ;;  %v2307_v59 = vpop.f32.mrf.mxu0 }
 0x299   : > { %v1185_v19 = vpop.f32.mrf.mxu0 }
 0x29b   : > { %v2308_v20 = vpop.f32.mrf.mxu0 }
 0x29d   : > { %v1292_v21 = vpop.f32.mrf.mxu0 }
 0x29e   : > { %v1298_v22 = vsel %vm1076_vm4, %v1292_v21, -inf }
 0x29f   : > { %1299 = vmax.xlane.f32.xlu0 %v1298_v22  ;;  %v2319_v23 = vpop.f32.mrf.mxu0 }
 0x2a1   : > { %v1295_v24 = vpop.f32.mrf.mxu0 }
 0x2a3   : > { %v2320_v25 = vpop.f32.mrf.mxu0 }
 0x2a5   : > { %v1402_v26 = vpop.f32.mrf.mxu0 }
 0x2a6   : > { %v1408_v27 = vsel %vm1076_vm4, %v1402_v26, -inf }
 0x2a7   : > { %1409 = vmax.xlane.f32.xlu0 %v1408_v27  ;;  %v2331_v28 = vpop.f32.mrf.mxu0 }
 0x2a9   : > { %v1405_v30 = vpop.f32.mrf.mxu0 }
 0x2ab   : > { %v2332_v31 = vpop.f32.mrf.mxu0 }
 0x2ad   : > { %v1079_v32 = vpop.xlane.xlu0 %1078  ;;  %v3451_v33 = vpop.f32.mrf.mxu0 }
 0x2ae   : > { %v1080_v34 = vsub.f32 %v1070_v57, %v1079_v32  ;;  %v1518_v35 = vsel %vm1076_vm4, %v3451_v33, -inf }
 0x2af   : > { %1519 = vmax.xlane.f32.xlu1 %v1518_v35  ;;  %v2343_v36 = vpop.f32.mrf.mxu0 }
 0x2b0   : > { %v1081_v37 = vmul.f32 1.442695, %v1080_v34 }
 0x2b1   : > { %v1515_v38 = vpop.f32.mrf.mxu0 }
 0x2b2   : > { %2487 = vpow2.f32 %v1081_v37  ;;  %v1471_v38 = vpack.c.bf16 %v1015_v1, %v1015_v1 }
 0x2b3   : > { %v2344_v39 = vpop.f32.mrf.mxu0 }
 0x2b4   : > { %v1691_v39 = vpack.c.bf16 %v1017_v2, %v1017_v2  ;;  %v1534_v1 = vsel %vm1092_vm3, %v1471_v38, 0 }
 0x2b5   : > { %v3455_v40 = vpop.f32.mrf.mxu0 }
 0x2b6   : > { %v1628_v41 = vsel %vm1076_vm4, %v3455_v40, -inf }
 0x2b7   : > { %1629 = vmax.xlane.f32.xlu0 %v1628_v41  ;;  %v2355_v43 = vpop.f32.mrf.mxu0 }
 0x2b9   : > { %v1625_v44 = vpop.f32.mrf.mxu0 }
 0x2bb   : > { %v2356_v46 = vpop.f32.mrf.mxu0 }
 0x2bd   : > { %v1732_v47 = vpop.f32.mrf.mxu0 }
 0x2be   : > { %v1738_v48 = vsel %vm1076_vm4, %v1732_v47, -inf }
 0x2bf   : > { %v2488_v49 = vpop.eup %2487  ;;  %1739 = vmax.xlane.f32.xlu1 %v1738_v48  ;;  %v2367_v51 = vpop.f32.mrf.mxu0 }
 0x2c0   : > { %v1083_v54 = vsel %vm1076_vm4, %v2488_v49, 0.0 }
 0x2c1   : > { %v1735_v53 = vpop.f32.mrf.mxu0 }
 0x2c3   : > { %1084 = vadd.xlane.f32.xlu1 %v1083_v54  ;;  %v2368_v56 = vpop.f32.mrf.mxu0 }
 0x2c5   : > { %v1842_v58 = vpop.f32.mrf.mxu0 }
 0x2c6   : > { %v1848_v62 = vsel %vm1076_vm4, %v1842_v58, -inf }
 0x2c7   : > { %1849 = vmax.xlane.f32.xlu0 %v1848_v62  ;;  %v2379_v45 = vpop.f32.mrf.mxu0 }
 0x2c9   : > { %v1845_v63 = vpop.f32.mrf.mxu0 }
 0x2cb   : > { %v2380_v0 = vpop.f32.mrf.mxu0 }
 0x320   : > { %v1190_v5 = vpop.xlane.xlu1 %1189 }
 0x321   : > { %v1191_v6 = vsub.f32 %v1182_v17, %v1190_v5  ;;  %v1251_v17 = vpack.c.bf16 %v3283_v61, %v3283_v61 }
 0x323   : > { %v1192_v7 = vmul.f32 1.442695, %v1191_v6  ;;  %v1314_v53 = vsel %vm1092_vm3, %v1251_v17, 0 }
 0x325   : > { %2489 = vpow2.f32 %v1192_v7 }
 0x328   : > { %v1300_v8 = vpop.xlane.xlu0 %1299 }
 0x329   : > { %v1301_v9 = vsub.f32 %v1292_v21, %v1300_v8 }
 0x32b   : > { %v1302_v52 = vmul.f32 1.442695, %v1301_v9 }
 0x32d   : > { %2491 = vpow2.f32 %v1302_v52 }
 0x330   : > { %v1410_v10 = vpop.xlane.xlu0 %1409 }
 0x331   : > { %v1411_v60 = vsub.f32 %v1402_v26, %v1410_v10 }
 0x332   : > { %v2490_v11 = vpop.eup %2489 }
 0x333   : > { %v1412_v42 = vmul.f32 1.442695, %v1411_v60  ;;  %v1194_v55 = vsel %vm1076_vm4, %v2490_v11, 0.0 }
 0x334   : > { %1195 = vadd.xlane.f32.xlu0 %v1194_v55  ;;  %v1754_v55 = vsel %vm1092_vm3, %v1691_v39, 0 }
 0x335   : > { %2493 = vpow2.f32 %v1412_v42 }
 0x338   : > { %v1520_v15 = vpop.xlane.xlu1 %1519 }
 0x339   : > { %v1521_v59 = vsub.f32 %v3451_v33, %v1520_v15 }
 0x33a   : > { %v3463_v12 = vpop.eup %2491 }
 0x33b   : > { %v1304_v57 = vsel %vm1076_vm4, %v3463_v12, 0.0  ;;  %v1522_v21 = vmul.f32 1.442695, %v1521_v59 }
 0x33c   : > { %1305 = vadd.xlane.f32.xlu1 %v1304_v57 }
 0x340   : > { %v1630_v19 = vpop.xlane.xlu0 %1629 }
 0x341   : > { %v1631_v22 = vsub.f32 %v3455_v40, %v1630_v19 }
 0x342   : > { %v3467_v13 = vpop.eup %2493 }
 0x343   : > { %v1414_v14 = vsel %vm1076_vm4, %v3467_v13, 0.0  ;;  %v1632_v61 = vmul.f32 1.442695, %v1631_v22  ;;  %v1946_v22 = vld [vmem:[%s3642_s2 + $0x68] sm:$0xff] }
 0x344   : > { %1415 = vadd.xlane.f32.xlu0 %v1414_v14 }
 0x348   : > { %v1740_v16 = vpop.xlane.xlu1 %1739 }
 0x349   : > { %v1741_v26 = vsub.f32 %v1732_v47, %v1740_v16 }
 0x34b   : > { %v1742_v28 = vmul.f32 1.442695, %v1741_v26  ;;  %v1945_v26 = vld [vmem:[%s3642_s2 + $0x60] sm:$0xff] }
 0x34c   : > { %v1085_v18 = vpop.xlane.xlu1 %1084 }
 0x34d   : > { %1421 = vrot.lane.b32.xlu1 %v1251_v17, %s2583_s29  ;;  %2495 = vrcp.f32 %v1085_v18 }
 0x34e   : > { %2497 = vpow2.f32 %v1522_v21  ;;  %v1942_v21 = vld [vmem:[%s3642_s2 + $0x48] sm:$0xff] }
 0x34f   : > { %2499 = vpow2.f32 %v1632_v61 }
 0x350   : > { %v1850_v24 = vpop.xlane.xlu0 %1849  ;;  %2501 = vpow2.f32 %v1742_v28  ;;  %v1943_v28 = vld [vmem:[%s3642_s2 + $0x50] sm:$0xff] }
 0x351   : > { %v1851_v27 = vsub.f32 %v1842_v58, %v1850_v24  ;;  %v1948_v24 = vld [vmem:[%s3642_s2 + $0x78] sm:$0xff] }
 0x353   : > { %v1852_v30 = vmul.f32 1.442695, %v1851_v27 }
 0x355   : > { %2503 = vpow2.f32 %v1852_v30  ;;  %v1947_v30 = vld [vmem:[%s3642_s2 + $0x70] sm:$0xff] }
 0x35a   : > { %1201 = vrot.lane.b32.xlu0 %v3418_v50, %s2583_s29  ;;  %v2496_v20 = vpop.eup %2495 }
 0x35b   : > { %v1087_v23 = vmul.f32 %v2496_v20, %v2488_v49  ;;  %v2498_v50 = vpop.eup %2497 }
 0x35c   : > { %v1524_v31 = vsel %vm1076_vm4, %v2498_v50, 0.0  ;;  %v3482_v32 = vpop.eup %2499 }
 0x35d   : > { %v1088_v25 = vpack.c.bf16 %v1087_v23, %v1087_v23  ;;  %v3484_v33 = vpop.eup %2501  ;;  %v1634_v34 = vsel %vm1076_vm4, %v3482_v32, 0.0  ;;  %v1954_v23 = vpack.c.bf16 %v1946_v22, %v1942_v21 }
 0x35e   : > { %v1744_v36 = vsel %vm1076_vm4, %v3484_v33, 0.0 }
 0x35f   : > { %2300 = vmatmul.mubr.msk.bf16.vlgmr.msra.gmra.mxu1 %vm1076_vm4, %v1088_v25  ;;  %v1941_v25 = vld [vmem:[%s3642_s2 + $0x40] sm:$0xff]  ;;  %1976 = vmatprep.subr.bf16.mxu0 %v1954_v23 }
 0x360   : > { %2311 = vmatprep.mubr.msk.bf16.mxu1 %vm2582_vm1, %v2581_v29  ;;  %v1953_v27 = vpack.c.bf16 %v1945_v26, %v1941_v25  ;;  %v2146_v25 = vld [vmem:[%s3643_s3] ss:$0 sm:$0xff] }
 0x362   : > { %v3488_v35 = vpop.eup %2503  ;;  %1977 = vmatpush1.bf16.xpose.msra.mxu0 %v1953_v27 }
 0x363   : > { %v1854_v37 = vsel %vm1076_vm4, %v3488_v35, 0.0 }
 0x371   : > { %1525 = vadd.xlane.f32.xlu1 %v1524_v31 }
 0x375   : > { %1635 = vadd.xlane.f32.xlu1 %v1634_v34 }
 0x379   : > { %1745 = vadd.xlane.f32.xlu1 %v1744_v36  ;;  %1855 = vadd.xlane.f32.xlu0 %v1854_v37 }
 0x38a   : > { %1641 = vrot.lane.b32.xlu1 %v1471_v38, %s2583_s29 }
 0x38e   : > { %1861 = vrot.lane.b32.xlu1 %v1691_v39, %s2583_s29 }
 0x3bd   : > { %v1196_v40 = vpop.xlane.xlu0 %1195 }
 0x3be   : > { %2505 = vrcp.f32 %v1196_v40 }
 0x3c5   : > { %v1306_v41 = vpop.xlane.xlu1 %1305 }
 0x3c6   : > { %2507 = vrcp.f32 %v1306_v41 }
 0x3c9   : > { %v1422_v56 = vpop.permute.xlu1 %1421 }
 0x3ca   : > { %v1427_v45 = vsel %vm1092_vm3, %v1422_v56, 0  ;;  %v1938_v56 = vld [vmem:[%s3642_s2 + $0x28] sm:$0xff] }
 0x3cb   : > { %v2506_v43 = vpop.eup %2505 }
 0x3cc   : > { %v1198_v46 = vmul.f32 %v2506_v43, %v2490_v11 }
 0x3cd   : > { %v1416_v44 = vpop.xlane.xlu0 %1415 }
 0x3ce   : > { %2509 = vrcp.f32 %v1416_v44  ;;  %v1199_v49 = vpack.c.bf16 %v1198_v46, %v1198_v46 }
 0x3d1   : > { %v1202_v47 = vpop.permute.xlu0 %1201 }
 0x3d2   : > { %v1207_v48 = vsel %vm1092_vm3, %v1202_v47, 0 }
 0x3d3   : > { %2310 = vmatpush3.bf16.msra.mxu1 %v1207_v48  ;;  %v2508_v51 = vpop.eup %2507 }
 0x3d4   : > { %2321 = vmatprep.subr.bf16.mxu1 %v2581_v29  ;;  %v1308_v54 = vmul.f32 %v2508_v51, %v3463_v12 }
 0x3d6   : > { %2312 = vmatmul.mubr.msk.bf16.vlgmr.msra.gmra.mxu1 %vm1076_vm4, %v1199_v49  ;;  %v1309_v58 = vpack.c.bf16 %v1308_v54, %v1308_v54  ;;  %v1934_v54 = vld [vmem:[%s3642_s2 + $0x8] sm:$0xff] }
 0x3d7   : > { %2322 = vmatpush3.bf16.msra.mxu1 %v1314_v53  ;;  %2323 = vmatprep.mubr.msk.bf16.mxu1 %vm2582_vm1, %v2581_v29 }
 0x3d8   : > { %2333 = vmatprep.subr.bf16.mxu1 %v2581_v29 }
 0x3db   : > { %v2510_v62 = vpop.eup %2509 }
 0x3dc   : > { %v1418_v63 = vmul.f32 %v2510_v62, %v3467_v13 }
 0x3de   : > { %2324 = vmatmul.mubr.msk.bf16.vlgmr.msra.gmra.mxu1 %vm1076_vm4, %v1309_v58  ;;  %v1419_v0 = vpack.c.bf16 %v1418_v63, %v1418_v63  ;;  %v1936_v58 = vld [vmem:[%s3642_s2 + $0x18] sm:$0xff] }
 0x3df   : > { %2334 = vmatpush3.bf16.msra.mxu1 %v1427_v45  ;;  %2335 = vmatprep.mubr.msk.bf16.mxu1 %vm2582_vm1, %v2581_v29  ;;  %v1950_v45 = vpack.c.bf16 %v1938_v56, %v1934_v54  ;;  %v1940_v63 = vld [vmem:[%s3642_s2 + $0x38] sm:$0xff] }
 0x3e0   : > { %2345 = vmatprep.subr.bf16.mxu1 %v2581_v29 }
 0x3e1   : > { %1978 = vmatprep.subr.bf16.mxu0 %v1950_v45 }
 0x3e6   : > { %2336 = vmatmul.mubr.msk.bf16.vlgmr.msra.gmra.mxu1 %vm1076_vm4, %v1419_v0  ;;  %v1933_v0 = vld [vmem:[%s3642_s2] sm:$0xff] }
 0x3e7   : > { %2346 = vmatpush3.bf16.msra.mxu1 %v1534_v1  ;;  %2347 = vmatprep.mubr.msk.bf16.mxu1 %vm2582_vm1, %v2581_v29  ;;  %v1937_v1 = vld [vmem:[%s3642_s2 + $0x20] sm:$0xff] }
 0x3e8   : > { %2357 = vmatprep.subr.bf16.mxu1 %v2581_v29 }
 0x3fa   : > { %v1526_v2 = vpop.xlane.xlu1 %1525 }
 0x3fb   : > { %2511 = vrcp.f32 %v1526_v2  ;;  %v1952_v2 = vpack.c.bf16 %v1940_v63, %v1936_v58 }
 0x3fe   : > { %v1636_v3 = vpop.xlane.xlu1 %1635 }
 0x3ff   : > { %2513 = vrcp.f32 %v1636_v3  ;;  %v1949_v3 = vpack.c.bf16 %v1937_v1, %v1933_v0 }
 0x401   : > { %1979 = vmatpush1.bf16.xpose.msra.mxu0 %v1949_v3 }
 0x402   : > { %v1746_v4 = vpop.xlane.xlu1 %1745  ;;  %v1856_v10 = vpop.xlane.xlu0 %1855 }
 0x403   : > { %2515 = vrcp.f32 %v1746_v4  ;;  %v1935_v4 = vld [vmem:[%s3642_s2 + $0x10] sm:$0xff] }
 0x404   : > { %2517 = vrcp.f32 %v1856_v10 }
 0x406   : > { %v1642_v7 = vpop.permute.xlu1 %1641 }
 0x407   : > { %v1647_v8 = vsel %vm1092_vm3, %v1642_v7, 0 }
 0x408   : > { %v2512_v5 = vpop.eup %2511 }
 0x409   : > { %v1528_v6 = vmul.f32 %v2512_v5, %v2498_v50  ;;  %v1955_v50 = vpack.c.bf16 %v1947_v30, %v1943_v28  ;;  %v1939_v5 = vld [vmem:[%s3642_s2 + $0x30] sm:$0xff] }
 0x40a   : > { %v1862_v57 = vpop.permute.xlu1 %1861  ;;  %v1951_v7 = vpack.c.bf16 %v1939_v5, %v1935_v4 }
 0x40b   : > { %v1529_v9 = vpack.c.bf16 %v1528_v6, %v1528_v6  ;;  %v1867_v15 = vsel %vm1092_vm3, %v1862_v57, 0 }
 0x40c   : > { %v2514_v52 = vpop.eup %2513 }
 0x40d   : > { %2348 = vmatmul.mubr.msk.bf16.vlgmr.msra.gmra.mxu1 %vm1076_vm4, %v1529_v9  ;;  %v1638_v60 = vmul.f32 %v2514_v52, %v3482_v32 }
 0x40e   : > { %2358 = vmatpush3.bf16.msra.mxu1 %v1647_v8  ;;  %2359 = vmatprep.mubr.msk.bf16.mxu1 %vm2582_vm1, %v2581_v29 }
 0x40f   : > { %2369 = vmatprep.subr.bf16.mxu1 %v2581_v29  ;;  %v1639_v11 = vpack.c.bf16 %v1638_v60, %v1638_v60 }
 0x410   : > { %v2516_v42 = vpop.eup %2515 }
 0x411   : > { %v1748_v12 = vmul.f32 %v2516_v42, %v3484_v33  ;;  %v2518_v14 = vpop.eup %2517 }
 0x412   : > { %v1858_v16 = vmul.f32 %v2518_v14, %v3488_v35 }
 0x413   : > { %v1749_v13 = vpack.c.bf16 %v1748_v12, %v1748_v12 }
 0x414   : > { %v1859_v59 = vpack.c.bf16 %v1858_v16, %v1858_v16 }
 0x415   : > { %2360 = vmatmul.mubr.msk.bf16.vlgmr.msra.gmra.mxu1 %vm1076_vm4, %v1639_v11 }
 0x416   : > { %2370 = vmatpush3.bf16.msra.mxu1 %v1754_v55  ;;  %2371 = vmatprep.mubr.msk.bf16.mxu1 %vm2582_vm1, %v2581_v29 }
 0x417   : > { %2381 = vmatprep.subr.bf16.mxu1 %v2581_v29 }
 0x41d   : > { %2372 = vmatmul.mubr.msk.bf16.vlgmr.msra.gmra.mxu1 %vm1076_vm4, %v1749_v13 }
 0x41e   : > { %2382 = vmatpush3.bf16.msra.mxu1 %v1867_v15  ;;  %2383 = vmatprep.mubr.msk.bf16.mxu1 %vm2582_vm1, %v2581_v29  ;;  %v1944_v29 = vld [vmem:[%s3642_s2 + $0x58] sm:$0xff] }
 0x41f   : > { %v3532_v17 = vpop.f32.mrf.mxu1  ;;  %v1956_v61 = vpack.c.bf16 %v1948_v24, %v1944_v29 }
 0x421   : > { %v2301_v18 = vpop.f32.mrf.mxu1  ;;  %2016 = vmatprep.subr.bf16.mxu1 %v1956_v61 }
 0x423   : > { %v1133_v19 = vpop.f32.mrf.mxu1 }
 0x425   : > { %2384 = vmatmul.mubr.msk.bf16.vlgmr.msra.gmra.mxu1 %vm1076_vm4, %v1859_v59  ;;  %v2302_v20 = vpop.f32.mrf.mxu1 }
 0x426   : > { %2017 = vmatpush1.bf16.xpose.msra.mxu1 %v1955_v50 }
 0x427   : > { %2018 = vmatprep.subr.bf16.mxu1 %v1952_v2 }
 0x42e   : > { %2019 = vmatpush1.bf16.xpose.msra.mxu1 %v1951_v7 }
 0x496   : > { %v1243_v31 = vpop.f32.mrf.mxu1 }
 0x498   : > { %v2313_v32 = vpop.f32.mrf.mxu1 }
 0x49a   : > { %v1246_v33 = vpop.f32.mrf.mxu1 }
 0x49c   : > { %v2314_v34 = vpop.f32.mrf.mxu1 }
 0x49e   : > { %v1350_v35 = vpop.f32.mrf.mxu1 }
 0x4a0   : > { %v2325_v36 = vpop.f32.mrf.mxu1 }
 0x4a2   : > { %v1353_v37 = vpop.f32.mrf.mxu1 }
 0x4a4   : > { %v2326_v38 = vpop.f32.mrf.mxu1 }
 0x4a6   : > { %v1463_v39 = vpop.f32.mrf.mxu1 }
 0x4a8   : > { %v2337_v40 = vpop.f32.mrf.mxu1 }
 0x4aa   : > { %v1466_v41 = vpop.f32.mrf.mxu1 }
 0x4ac   : > { %v2338_v43 = vpop.f32.mrf.mxu1 }
 0x4cd   : > { %v1570_v44 = vpop.f32.mrf.mxu1 }
 0x4cf   : > { %v2349_v46 = vpop.f32.mrf.mxu1 }
 0x4d1   : > { %v1573_v47 = vpop.f32.mrf.mxu1 }
 0x4d3   : > { %v2350_v48 = vpop.f32.mrf.mxu1 }
 0x4d5   : > { %v1683_v49 = vpop.f32.mrf.mxu1 }
 0x4d6   : > { %v2482_v55 = vpack.i.bf16 %v1683_v49, %v1243_v31 }
 0x4d7   : > { %v2361_v51 = vpop.f32.mrf.mxu1 }
 0x4d9   : > { %v1686_v53 = vpop.f32.mrf.mxu1 }
 0x4db   : > { %v2362_v62 = vpop.f32.mrf.mxu1 }
 0x4dd   : > { %v1790_v6 = vpop.f32.mrf.mxu1 }
 0x4df   : > { %v2373_v8 = vpop.f32.mrf.mxu1 }
 0x4e1   : > { %v1793_v9 = vpop.f32.mrf.mxu1 }
 0x4e3   : > { %v2374_v52 = vpop.f32.mrf.mxu1 }
 0x4e5   : > { %v1903_v10 = vpop.f32.mrf.mxu1 }
 0x4e6   : > { %v2477_v60 = vpack.i.bf16 %v1903_v10, %v1463_v39 }
 0x4e7   : > { %v2385_v11 = vpop.f32.mrf.mxu1 }
 0x4e8   : > { %2478 = vrot.lane.b32.xlu1 %v2477_v60, %s2583_s29 }
 0x4e9   : > { %v1906_v42 = vpop.f32.mrf.mxu1 }
 0x4eb   : > { %v2386_v12 = vpop.f32.mrf.mxu1 }
 0x4ec   : > { %2483 = vrot.lane.b32.xlu1 %v2482_v55, %s2583_s29  ;;  %s186_s29 = sand.u32 1, %s2571_s16  }
 0x4ed   : > { %s2122_s5 = sshll.u32 %s186_s29, 3  ;;  %s2046_s19 = scalar_lea.sflag [#allocation3], %s186_s29 }
 0x4ee   : > { %s188_s9 = scalar_lea.vmem [#allocation2], %s2122_s5 }
 0x4ef   : > { %s2059_s10 = sshll.u32 %s188_s9, 4  ;;  %s3600_s10 = int_to_ptr.vmem [resolvable:$true] %s2059_s10 }
 0x4f0   : > { %s2519_s6 = scalar_lea.vmem %s3600_s10, 128  ;;  %p2526_p0 = scmp.lt.s32.totalorder %s3600_s10, %s2524_s20 }
 0x4f1   : > { %p2520_p11 = scmp.ne.s32.totalorder %s3600_s10, %s2519_s6  ;;  %p2527_p1 = scmp.lt.s32.totalorder %s2525_s22, %s2519_s6 }
 0x4f3   : > { %p2521_p12 = pnand %p2520_p11, %p2648_p5  ;;  %p2528_p2 = por %p2527_p1, %p2526_p0 }
 0x4f5   : > { %p2522_p13 = pneg %p2521_p12 }
 0x4f7   : > { %p2529_p3 = pnand %p2528_p2, %p2522_p13 }
 0x55a   : > { %v2479_v57 = vpop.permute.xlu1 %2478 }
 0x55b   : > { %v2481_v13 = vunpack.i.h.bf16 %v2479_v57  ;;  %v2480_v14 = vunpack.i.l.bf16 %v2479_v57 }
 0x55d   : > { %v1926_v15 = vsel %vm1029_vm2, %v1350_v35, %v2480_v14  ;;  %v1928_v16 = vsel %vm1029_vm2, %v1790_v6, %v2481_v13 }
 0x55e   : > { %v2484_v18 = vpop.permute.xlu1 %2483  ;;  %v1930_v59 = vpack.c.bf16 %v1926_v15, %v1926_v15  ;;  %v1932_v19 = vpack.c.bf16 %v1928_v16, %v1928_v16 }
 0x55f   : > { %v2486_v20 = vunpack.i.h.bf16 %v2484_v18  ;;  %v2485_v21 = vunpack.i.l.bf16 %v2484_v18 }
 0x560   : > { %1996 = vmatprep.mubr.bf16.mxu0 %v1930_v59  ;;  %2036 = vmatprep.mubr.bf16.mxu1 %v1932_v19 }
 0x561   : > { %v1927_v22 = vsel %vm1029_vm2, %v1570_v44, %v2486_v20  ;;  %v1925_v29 = vsel %vm1029_vm2, %v3532_v17, %v2485_v21 }
 0x562   : > { %v1931_v23 = vpack.c.bf16 %v1927_v22, %v1927_v22  ;;  %v1929_v24 = vpack.c.bf16 %v1925_v29, %v1925_v29 }
 0x564   : > { %1997 = vmatmul.mubr.bf16.vlgmr.msra.gmra.mxu0 %v1929_v24  ;;  %2037 = vmatmul.mubr.bf16.vlgmr.msra.gmra.mxu1 %v1931_v23 }
 0x624   : > { %v1998_v26 = vpop.f32.mrf.mxu0  ;;  %v2038_v61 = vpop.f32.mrf.mxu1 }
 0x625   : > { %v1999_v27 = vadd.f32 %v2146_v25, %v1998_v26 }
 0x626   : > { %v2000_v28 = vpop.f32.mrf.mxu0  ;;  %v2040_v30 = vpop.f32.mrf.mxu1 }
 0x627   : > { %v2039_v17 = vadd.f32 %v2038_v61, %v1999_v27 }
 0x628   : > { %v2001_v50 = vpop.f32.mrf.mxu0  ;;  %v2041_v31 = vpop.f32.mrf.mxu1 }
 0x629   : > { %2044 = vst.msk [vmem:[%s188_s9] sm:$0xff] %vm484_vm0, %v2039_v17 }
 0x62a   : > { %v2002_v32 = vpop.f32.mrf.mxu0  ;;  %v2042_v33 = vpop.f32.mrf.mxu1 }
 0x62b   : > { %2532 = shalt.err (!%p2529_p3)
}
 0x62c   : > { %s2533_s23 = scalar_lea.hbm %s3598_s13, 128  ;;  %s2537_s29 = scalar_lea.hbm %s3644_s4, 256 }
 0x62d   : > { %p2534_p4 = scmp.ne.s32.totalorder %s3598_s13, %s2533_s23  ;;  %p2538_p9 = scmp.lt.s32.totalorder %s3598_s13, %s3644_s4 }
 0x62e   : > { %p2539_p10 = scmp.lt.s32.totalorder %s2537_s29, %s2533_s23 }
 0x62f   : > { %p2535_p7 = pnand %p2534_p4, %p2648_p5 }
 0x630   : > { %p2540_p11 = por %p2539_p10, %p2538_p9 }
 0x631   : > { %p2536_p8 = pneg %p2535_p7 }
 0x633   : > { %p2541_p12 = pnand %p2540_p11, %p2536_p8 }
 0x635   : > { %2544 = shalt.err (!%p2541_p12)
}
 0x636   : > { %2435 = dma.vmem_to_hbm [thread:$0]  (%p2648_p5), %s3600_s10, 128, %s3598_s13, %s2046_s19  }
 0x637 PF: > { %p2441_p13 = scmp.ge.s32.totalorder %s2579_s18, 2  ;;  %s2071_s7 = sand.u32 1, %s2567_s15  }
 0x638   : > { %s2072_s8 = scalar_lea.sflag [#allocation3], %s2071_s7 }
 0x639   : > { %p2438_p0 = pnand %p2441_p13, %p2652_p6 }
 0x63b   : > { %p2439_p1 = pneg %p2438_p0 }
 0x63d   : > { %2562 = dma.done.wait (%p2439_p1), %s2072_s8, 128  }
 0x63e   : > { %2564 = vsyncadd (%p2439_p1), %s2072_s8, 4294967168  ;;  %p14_p2 = scmp.ge.s32.totalorder %s2635_s21, 4   ;;  %s3647_s15 = smov %s2571_s16 }
 0x63f   : > { %s3648_s16 = smov %s2575_s17  ;;  %s3649_s17 = smov %s2646_s24 }
 0x640   : > { %s3650_s18 = smov %s2635_s21  ;;  %16 = sbr.rel (!%p14_p2) target bundleno = 3 (0x3), region = 71 }
 0x645   :  { %2077 = vsyncpa [#allocation3], 1 }
 0x646   :  { %2079 = vsyncpa [#allocation3 + $0x1], 1 }

</bundles_post_ra>
